<compile_context>
chip_gen: v6e
topology: v6e:2x2x1
jax: 0.10.0
libtpu: 0.0.40
codegen_flags: <defaults>
</compile_context>

<pallas_src>
import math
import functools

import jax
import jax.numpy as jnp
from jax.experimental import pallas as pl
from jax.experimental.pallas import tpu as pltpu


VMEM_LIMIT = 32 * 1024 * 1024  # safe on v5e (raises 16 MiB default) and v7x (64 MiB part)
COMPUTE_DTYPE = jnp.bfloat16   # MXU inputs; accumulation stays f32


# ----------------------------------------------------------------------------
# Fused attention (+ out-proj + residual + LayerNorm) kernel
# ----------------------------------------------------------------------------

def _attn_ln_kernel(*refs, num_heads, scale, eps, shared_qk, res_is_v, has_bias):
    it = iter(refs)
    q_ref = next(it)
    k_ref = q_ref if shared_qk else next(it)
    v_ref = next(it)
    res_ref = v_ref if res_is_v else next(it)
    in_w_ref = next(it)
    in_b_ref = next(it)
    out_w_ref = next(it)
    out_b_ref = next(it)
    g_ref = next(it)
    beta_ref = next(it)
    bias_ref = next(it) if has_bias else None
    o_ref = next(it)

    D = in_w_ref.shape[0]
    dh = D // num_heads
    cdt = COMPUTE_DTYPE

    in_w = in_w_ref[...].astype(cdt)          # [D, 3D]
    in_b = in_b_ref[...]                      # [1, 3D] (f32)

    q_src = q_ref[0].astype(cdt)              # [Lq, D]
    v_src = v_ref[0].astype(cdt)              # [Lk, D]

    if shared_qk:
        # one [Lq, D] x [D, 2D] matmul for Q and K (same source)
        qk = jnp.dot(q_src, in_w[:, :2 * D],
                     preferred_element_type=jnp.float32) + in_b[:, :2 * D]
        q = qk[:, :D]
        k = qk[:, D:]
    else:
        k_src = k_ref[0].astype(cdt)
        q = jnp.dot(q_src, in_w[:, :D],
                    preferred_element_type=jnp.float32) + in_b[:, :D]
        k = jnp.dot(k_src, in_w[:, D:2 * D],
                    preferred_element_type=jnp.float32) + in_b[:, D:2 * D]
    v = jnp.dot(v_src, in_w[:, 2 * D:],
                preferred_element_type=jnp.float32) + in_b[:, 2 * D:]

    bias = bias_ref[0] if has_bias else None  # [1, Lk] additive key bias

    # All heads of this batch element in one grid step.
    head_outs = []
    for h in range(num_heads):
        sl = slice(h * dh, (h + 1) * dh)
        qh = q[:, sl]                                   # [Lq, dh] f32
        kh = k[:, sl]                                   # [Lk, dh] f32
        vh = v[:, sl]                                   # [Lk, dh] f32
        s = jnp.dot(qh, kh.T, preferred_element_type=jnp.float32) * scale
        if has_bias:
            s = s + bias
        m = jnp.max(s, axis=-1, keepdims=True)
        p = jnp.exp(s - m)
        p = p * pl.reciprocal(jnp.sum(p, axis=-1, keepdims=True), approx=True)
        head_outs.append(jnp.dot(p.astype(cdt), vh.astype(cdt),
                                 preferred_element_type=jnp.float32))
    attn = jnp.concatenate(head_outs, axis=-1)          # [Lq, D]

    # out-proj + residual + LayerNorm epilogue (f32 statistics)
    y = jnp.dot(attn.astype(cdt), out_w_ref[...].astype(cdt),
                preferred_element_type=jnp.float32) + out_b_ref[...]
    x = res_ref[0].astype(jnp.float32) + y
    mu = jnp.mean(x, axis=-1, keepdims=True)
    var = jnp.mean(jnp.square(x - mu), axis=-1, keepdims=True)
    xn = (x - mu) * jax.lax.rsqrt(var + eps)
    o_ref[0] = (xn * g_ref[...] + beta_ref[...]).astype(o_ref.dtype)


def attn_ln(q_src, k_src, v_src, res, in_w, in_b, out_w, out_b, gamma, beta,
            num_heads, key_bias=None, shared_qk=False, res_is_v=False,
            eps=1e-5):
    """LayerNorm(res + MHA(q_src, k_src, v_src)) fused in one pallas_call.

    q_src/k_src/v_src/res: [B, L, D] batch-major.  key_bias: [B, 1, Lk] or None.
    shared_qk: Q and K projections share q_src (self-attention).
    res_is_v:  residual equals v_src (self-attention)."""
    B, Lq, D = q_src.shape
    Lk = v_src.shape[1]
    dh = D // num_heads
    scale = 1.0 / math.sqrt(dh)
    has_bias = key_bias is not None

    inputs = [q_src]
    in_specs = [pl.BlockSpec((1, Lq, D), lambda b: (b, 0, 0))]
    if not shared_qk:
        inputs.append(k_src)
        in_specs.append(pl.BlockSpec((1, Lk, D), lambda b: (b, 0, 0)))
    inputs.append(v_src)
    in_specs.append(pl.BlockSpec((1, Lk, D), lambda b: (b, 0, 0)))
    if not res_is_v:
        inputs.append(res)
        in_specs.append(pl.BlockSpec((1, Lq, D), lambda b: (b, 0, 0)))
    inputs += [in_w, in_b.reshape(1, 3 * D), out_w, out_b.reshape(1, D),
               gamma.reshape(1, D), beta.reshape(1, D)]
    in_specs += [
        pl.BlockSpec((D, 3 * D), lambda b: (0, 0)),
        pl.BlockSpec((1, 3 * D), lambda b: (0, 0)),
        pl.BlockSpec((D, D), lambda b: (0, 0)),
        pl.BlockSpec((1, D), lambda b: (0, 0)),
        pl.BlockSpec((1, D), lambda b: (0, 0)),
        pl.BlockSpec((1, D), lambda b: (0, 0)),
    ]
    if has_bias:
        inputs.append(key_bias)
        in_specs.append(pl.BlockSpec((1, 1, Lk), lambda b: (b, 0, 0)))

    kernel = functools.partial(_attn_ln_kernel, num_heads=num_heads,
                               scale=scale, eps=eps, shared_qk=shared_qk,
                               res_is_v=res_is_v, has_bias=has_bias)
    return pl.pallas_call(
        kernel,
        out_shape=jax.ShapeDtypeStruct((B, Lq, D), jnp.float32),
        grid=(B,),
        in_specs=in_specs,
        out_specs=pl.BlockSpec((1, Lq, D), lambda b: (b, 0, 0)),
        compiler_params=pltpu.CompilerParams(
            dimension_semantics=("parallel",),
            vmem_limit_bytes=VMEM_LIMIT),
    )(*inputs)


# ----------------------------------------------------------------------------
# Fused FFN (+ residual + LayerNorm) kernel
# ----------------------------------------------------------------------------

def _ffn_ln_kernel(x_ref, w1_ref, b1_ref, w2_ref, b2_ref, g_ref, beta_ref,
                   o_ref, *, eps):
    cdt = COMPUTE_DTYPE
    x = x_ref[0].astype(jnp.float32)                    # [L, D]
    h = jnp.dot(x.astype(cdt), w1_ref[...].astype(cdt),
                preferred_element_type=jnp.float32) + b1_ref[...]
    h = jnp.maximum(h, 0.0)
    y = jnp.dot(h.astype(cdt), w2_ref[...].astype(cdt),
                preferred_element_type=jnp.float32) + b2_ref[...]
    z = x + y
    mu = jnp.mean(z, axis=-1, keepdims=True)
    var = jnp.mean(jnp.square(z - mu), axis=-1, keepdims=True)
    zn = (z - mu) * jax.lax.rsqrt(var + eps)
    o_ref[0] = (zn * g_ref[...] + beta_ref[...]).astype(o_ref.dtype)


def ffn_ln(x, w1, b1, w2, b2, gamma, beta, eps=1e-5):
    """LayerNorm(x + W2 relu(W1 x + b1) + b2).  x: [B, L, D]."""
    B, L, D = x.shape
    F = w1.shape[1]
    return pl.pallas_call(
        functools.partial(_ffn_ln_kernel, eps=eps),
        out_shape=jax.ShapeDtypeStruct((B, L, D), jnp.float32),
        grid=(B,),
        in_specs=[
            pl.BlockSpec((1, L, D), lambda b: (b, 0, 0)),
            pl.BlockSpec((D, F), lambda b: (0, 0)),
            pl.BlockSpec((1, F), lambda b: (0, 0)),
            pl.BlockSpec((F, D), lambda b: (0, 0)),
            pl.BlockSpec((1, D), lambda b: (0, 0)),
            pl.BlockSpec((1, D), lambda b: (0, 0)),
            pl.BlockSpec((1, D), lambda b: (0, 0)),
        ],
        out_specs=pl.BlockSpec((1, L, D), lambda b: (b, 0, 0)),
        compiler_params=pltpu.CompilerParams(
            dimension_semantics=("parallel",),
            vmem_limit_bytes=VMEM_LIMIT),
    )(x, w1, b1.reshape(1, F), w2, b2.reshape(1, D),
      gamma.reshape(1, D), beta.reshape(1, D))


# ----------------------------------------------------------------------------
# Small glue ops (left to XLA: launch overhead would exceed their compute)
# ----------------------------------------------------------------------------

def mlp_jnp(x, layers):
    """DETR-style MLP: Linear(+ReLU) stack, no activation after last layer."""
    n = len(layers)
    for i, (w, b) in enumerate(layers):
        x = x @ w + b
        if i < n - 1:
            x = jax.nn.relu(x)
    return x


def inverse_sigmoid(x):
    x = jnp.clip(x, 0.0, 1.0)
    return jnp.log(jnp.maximum(x, 1e-5) / jnp.maximum(1.0 - x, 1e-5))


def pos2posembed(pos, d_model, scale, temperature=10000.0):
    num_pos_feats = d_model // 2
    dim_t = jnp.arange(num_pos_feats, dtype=jnp.float32)
    dim_t_ = jnp.floor(dim_t / 2.0) / num_pos_feats
    dim_t = jnp.power(temperature, 2.0 * dim_t_)

    def embed(coord):
        e = (coord * scale)[..., None] / dim_t
        s = jnp.sin(e[..., 0::2])
        c = jnp.cos(e[..., 1::2])
        return jnp.stack((s, c), axis=-1).reshape(*e.shape[:-1], num_pos_feats)

    pos_x = embed(pos[..., 0])
    pos_y = embed(pos[..., 1])
    posemb = jnp.concatenate((pos_y, pos_x), axis=-1)
    if pos.shape[-1] == 4:
        pos_w = embed(pos[..., 2])
        pos_h = embed(pos[..., 3])
        posemb = jnp.concatenate((posemb, pos_w, pos_h), axis=-1)
    return posemb


# ----------------------------------------------------------------------------
# Decoder layer (two fused Pallas calls + one fused FFN call)
# ----------------------------------------------------------------------------

def decoder_layer_forward(tgt, memory, pos, query_pos, key_bias, p, H):
    # --- self attention + residual + LayerNorm (one pallas_call) ---
    tgt = attn_ln(q_src=tgt + query_pos, k_src=None, v_src=tgt, res=None,
                  in_w=p["sa_in_w"], in_b=p["sa_in_b"],
                  out_w=p["sa_out_w"], out_b=p["sa_out_b"],
                  gamma=p["norm1_g"], beta=p["norm1_b"], num_heads=H,
                  key_bias=None, shared_qk=True, res_is_v=True)
    # --- cross attention + residual + LayerNorm (one pallas_call) ---
    k2 = memory + pos if pos is not None else memory
    tgt = attn_ln(q_src=tgt + query_pos, k_src=k2, v_src=memory, res=tgt,
                  in_w=p["ca_in_w"], in_b=p["ca_in_b"],
                  out_w=p["ca_out_w"], out_b=p["ca_out_b"],
                  gamma=p["norm2_g"], beta=p["norm2_b"], num_heads=H,
                  key_bias=key_bias, shared_qk=False, res_is_v=False)
    # --- FFN + residual + LayerNorm (one pallas_call) ---
    tgt = ffn_ln(tgt, p["ffn_w1"], p["ffn_b1"], p["ffn_w2"], p["ffn_b2"],
                 p["norm3_g"], p["norm3_b"])
    return tgt


# ----------------------------------------------------------------------------
# Parameter initialization (deterministic, xavier-uniform like the module)
# ----------------------------------------------------------------------------

def init_params(key, d_model, num_decoder, num_heads, mlp_ratio, num_classes,
                num_queries_one2one, num_queries_one2many):
    num_queries = num_queries_one2one + num_queries_one2many
    ff = int(d_model * mlp_ratio)
    keys = list(jax.random.split(key, 512))
    kit = iter(keys)

    def xav(fan_in, fan_out):
        a = math.sqrt(6.0 / (fan_in + fan_out))
        return jax.random.uniform(next(kit), (fan_in, fan_out), jnp.float32, -a, a)

    def zeros(*shape):
        return jnp.zeros(shape, jnp.float32)

    def ones(*shape):
        return jnp.ones(shape, jnp.float32)

    D = d_model
    params = {
        "d_model": D,
        "num_heads": num_heads,
        "num_queries_one2one": num_queries_one2one,
        "query_embed": xav(num_queries, D),
    }
    # refpoint embedding: xavier, then first 2 cols = inverse_sigmoid(U(0,1))
    refp = xav(num_queries, 4)
    u = jax.random.uniform(next(kit), (num_queries, 2), jnp.float32, 0.0, 1.0)
    refp = refp.at[:, :2].set(inverse_sigmoid(u))
    params["refpoint_embed"] = refp

    # shared ref_point_head: MLP(2D -> D -> D), 2 layers
    params["rph"] = [(xav(2 * D, D), zeros(D)), (xav(D, D), zeros(D))]

    layers = []
    for _ in range(num_decoder):
        layers.append({
            "sa_in_w": xav(D, 3 * D), "sa_in_b": zeros(3 * D),
            "sa_out_w": xav(D, D), "sa_out_b": zeros(D),
            "norm1_g": ones(D), "norm1_b": zeros(D),
            "ca_in_w": xav(D, 3 * D), "ca_in_b": zeros(3 * D),
            "ca_out_w": xav(D, D), "ca_out_b": zeros(D),
            "norm2_g": ones(D), "norm2_b": zeros(D),
            "ffn_w1": xav(D, ff), "ffn_b1": zeros(ff),
            "ffn_w2": xav(ff, D), "ffn_b2": zeros(D),
            "norm3_g": ones(D), "norm3_b": zeros(D),
        })
    params["layers"] = layers

    bias_value = -math.log((1.0 - 0.01) / 0.01)
    params["cls"] = [(xav(D, num_classes),
                      jnp.full((num_classes,), bias_value, jnp.float32))
                     for _ in range(num_decoder)]
    # bbox MLP(D -> D -> D -> 4), last layer weight/bias zeroed (per init_weight)
    params["bbox"] = [[(xav(D, D), zeros(D)),
                       (xav(D, D), zeros(D)),
                       (zeros(D, 4), zeros(4))]
                      for _ in range(num_decoder)]
    return params


# ----------------------------------------------------------------------------
# Full forward (batch-major internally; matches PyTorch output layout)
# ----------------------------------------------------------------------------

def detrx_decoder_forward(params, src, src_mask=None, pos_embed=None,
                          is_train=False):
    """src: [N, B, C], src_mask: [B, N] bool (True = padded) or None,
       pos_embed: [N, B, C] or None."""
    D = params["d_model"]
    H = params["num_heads"]
    Q1 = params["num_queries_one2one"]
    scale = 2.0 * math.pi
    N, B, _ = src.shape

    # One transpose of the encoder tensors to batch-major; everything after
    # this stays [B, L, D] so no transposes are needed around attention and
    # the prediction heads are already in the PyTorch output layout.
    memory = jnp.transpose(src, (1, 0, 2))                       # [B, N, D]
    pos = jnp.transpose(pos_embed, (1, 0, 2)) if pos_embed is not None else None

    # TODO(synk): one2many training branch (block-diagonal self-attn mask) is
    # not exercised here; eval path (is_train=False) only.
    tgt = jnp.broadcast_to(params["query_embed"][None, :Q1, :], (B, Q1, D))
    refp = jnp.broadcast_to(params["refpoint_embed"][None, :Q1, :], (B, Q1, 4))
    ref_point = jax.nn.sigmoid(refp)

    key_bias = None
    if src_mask is not None:
        # finite additive bias (instead of -inf) so fully-masked rows stay finite
        key_bias = jnp.where(src_mask, -1e9, 0.0).astype(jnp.float32)[:, None, :]

    output = tgt
    outputs = []
    coords = []
    for layer_id, lp in enumerate(params["layers"]):
        qse = pos2posembed(ref_point, D, scale)                  # [B, Q1, 2D]
        query_pos = mlp_jnp(qse, params["rph"])                  # [B, Q1, D]
        output = decoder_layer_forward(output, memory, pos, query_pos,
                                       key_bias, lp, H)
        tmp = mlp_jnp(output, params["bbox"][layer_id])          # [B, Q1, 4]
        new_ref = jax.nn.sigmoid(tmp + inverse_sigmoid(ref_point))
        outputs.append(output)
        coords.append(new_ref)     # == per-layer output_coord (look_forward_twice=False)
        ref_point = jax.lax.stop_gradient(new_ref)

    # class heads: tiny matmuls, plain jnp (box coords reused from the loop)
    cls_list = [out @ cw + cb for out, (cw, cb) in zip(outputs, params["cls"])]

    return {"pred_logits": cls_list[-1],       # [B, Q1, num_classes]
            "pred_boxes": coords[-1]}          # [B, Q1, 4]


# ----------------------------------------------------------------------------
# Demo
# ----------------------------------------------------------------------------

if __name__ == "__main__":
    # small shapes
    d_model = 32
    num_decoder = 2
    num_heads = 4
    mlp_ratio = 4.0
    num_classes = 8
    num_queries_one2one = 8
    num_queries_one2many = 16
    B = 2
    N = 16  # memory (encoder) sequence length

    root = jax.random.PRNGKey(0)
    k_params, k_src, k_pos = jax.random.split(root, 3)

    params = init_params(k_params, d_model, num_decoder, num_heads, mlp_ratio,
                         num_classes, num_queries_one2one, num_queries_one2many)

    src = jax.random.normal(k_src, (N, B, d_model), jnp.float32)
    pos_embed = jax.random.normal(k_pos, (N, B, d_model), jnp.float32)
    # key padding mask: pad the last 3 memory tokens of the second batch element
    src_mask = jnp.zeros((B, N), dtype=bool).at[1, N - 3:].set(True)

    fwd = jax.jit(functools.partial(detrx_decoder_forward, params,
                                    is_train=False))
    out = fwd(src, src_mask, pos_embed)
    jax.block_until_ready(out["pred_logits"])
    jax.block_until_ready(out["pred_boxes"])

    assert out["pred_logits"].shape == (B, num_queries_one2one, num_classes)
    assert out["pred_boxes"].shape == (B, num_queries_one2one, 4)
    assert bool(jnp.all(jnp.isfinite(out["pred_logits"])))
    assert bool(jnp.all(jnp.isfinite(out["pred_boxes"])))
    print("KERNEL_OK")
</pallas_src>

<mosaic_0001>
module attributes {stable_mosaic.version = 11 : i64} {
  func.func @_ffn_ln_kernel(%arg0: i32, %arg1: memref<1x8x32xf32, #tpu.memory_space<vmem>>, %arg2: memref<32x128xf32, #tpu.memory_space<vmem>>, %arg3: memref<1x128xf32, #tpu.memory_space<vmem>>, %arg4: memref<128x32xf32, #tpu.memory_space<vmem>>, %arg5: memref<1x32xf32, #tpu.memory_space<vmem>>, %arg6: memref<1x32xf32, #tpu.memory_space<vmem>>, %arg7: memref<1x32xf32, #tpu.memory_space<vmem>>, %arg8: memref<1x8x32xf32, #tpu.memory_space<vmem>>) attributes {dimension_semantics = [#tpu.dimension_semantics<parallel>], iteration_bounds = array<i64: 2>, scalar_prefetch = 0 : i64, scratch_operands = 0 : i64, tpu.core_type = #tpu.core_type<tc>, window_params = [{transform_indices = @transform_0, window_bounds = array<i64: 1, 8, 32>}, {pipeline_mode = #tpu.pipeline_mode<synchronous>, transform_indices = @transform_1, window_bounds = array<i64: 32, 128>}, {pipeline_mode = #tpu.pipeline_mode<synchronous>, transform_indices = @transform_2, window_bounds = array<i64: 1, 128>}, {pipeline_mode = #tpu.pipeline_mode<synchronous>, transform_indices = @transform_3, window_bounds = array<i64: 128, 32>}, {pipeline_mode = #tpu.pipeline_mode<synchronous>, transform_indices = @transform_4, window_bounds = array<i64: 1, 32>}, {pipeline_mode = #tpu.pipeline_mode<synchronous>, transform_indices = @transform_5, window_bounds = array<i64: 1, 32>}, {pipeline_mode = #tpu.pipeline_mode<synchronous>, transform_indices = @transform_6, window_bounds = array<i64: 1, 32>}, {transform_indices = @transform_7, window_bounds = array<i64: 1, 8, 32>}]} {
    %c0 = arith.constant 0 : index
    %c0_0 = arith.constant 0 : index
    %c0_1 = arith.constant 0 : index
    %0 = vector.load %arg1[%c0, %c0_0, %c0_1] : memref<1x8x32xf32, #tpu.memory_space<vmem>>, vector<1x8x32xf32>
    %1 = vector.shape_cast %0 : vector<1x8x32xf32> to vector<8x32xf32>
    %2 = arith.truncf %1 : vector<8x32xf32> to vector<8x32xbf16>
    %c0_2 = arith.constant 0 : index
    %c0_3 = arith.constant 0 : index
    %3 = vector.load %arg2[%c0_2, %c0_3] : memref<32x128xf32, #tpu.memory_space<vmem>>, vector<32x128xf32>
    %4 = arith.truncf %3 : vector<32x128xf32> to vector<32x128xbf16>
    %cst = arith.constant dense<0.000000e+00> : vector<8x128xf32>
    %5 = tpu.matmul %2, %4, %cst {dimension_numbers = #tpu.dot_dimension_numbers<[1], [0], [0], [1], [0, 0, 1, 1], [], []>} : vector<8x32xbf16>, vector<32x128xbf16>, vector<8x128xf32> -> vector<8x128xf32>
    %c0_4 = arith.constant 0 : index
    %c0_5 = arith.constant 0 : index
    %6 = vector.load %arg3[%c0_4, %c0_5] : memref<1x128xf32, #tpu.memory_space<vmem>>, vector<1x128xf32>
    %7 = vector.broadcast %6 : vector<1x128xf32> to vector<8x128xf32>
    %8 = arith.addf %5, %7 : vector<8x128xf32>
    %cst_6 = arith.constant 0.000000e+00 : f32
    %9 = vector.broadcast %cst_6 : f32 to vector<8x128xf32>
    %10 = arith.maximumf %8, %9 : vector<8x128xf32>
    %11 = arith.truncf %10 : vector<8x128xf32> to vector<8x128xbf16>
    %c0_7 = arith.constant 0 : index
    %c0_8 = arith.constant 0 : index
    %12 = vector.load %arg4[%c0_7, %c0_8] : memref<128x32xf32, #tpu.memory_space<vmem>>, vector<128x32xf32>
    %13 = arith.truncf %12 : vector<128x32xf32> to vector<128x32xbf16>
    %cst_9 = arith.constant dense<0.000000e+00> : vector<8x32xf32>
    %14 = tpu.matmul %11, %13, %cst_9 {dimension_numbers = #tpu.dot_dimension_numbers<[1], [0], [0], [1], [0, 0, 1, 1], [], []>} : vector<8x128xbf16>, vector<128x32xbf16>, vector<8x32xf32> -> vector<8x32xf32>
    %c0_10 = arith.constant 0 : index
    %c0_11 = arith.constant 0 : index
    %15 = vector.load %arg5[%c0_10, %c0_11] : memref<1x32xf32, #tpu.memory_space<vmem>>, vector<1x32xf32>
    %16 = vector.broadcast %15 : vector<1x32xf32> to vector<8x32xf32>
    %17 = arith.addf %14, %16 : vector<8x32xf32>
    %18 = arith.addf %1, %17 : vector<8x32xf32>
    %cst_12 = arith.constant dense<0.000000e+00> : vector<8xf32>
    %19 = vector.multi_reduction <add>, %18, %cst_12 [1] : vector<8x32xf32> to vector<8xf32>
    %20 = vector.shape_cast %19 : vector<8xf32> to vector<8x1xf32>
    %cst_13 = arith.constant 3.200000e+01 : f32
    %21 = vector.broadcast %cst_13 : f32 to vector<8x1xf32>
    %22 = arith.divf %20, %21 : vector<8x1xf32>
    %23 = vector.broadcast %22 : vector<8x1xf32> to vector<8x32xf32>
    %24 = arith.subf %18, %23 : vector<8x32xf32>
    %25 = arith.mulf %24, %24 : vector<8x32xf32>
    %cst_14 = arith.constant dense<0.000000e+00> : vector<8xf32>
    %26 = vector.multi_reduction <add>, %25, %cst_14 [1] : vector<8x32xf32> to vector<8xf32>
    %27 = vector.shape_cast %26 : vector<8xf32> to vector<8x1xf32>
    %cst_15 = arith.constant 3.200000e+01 : f32
    %28 = vector.broadcast %cst_15 : f32 to vector<8x1xf32>
    %29 = arith.divf %27, %28 : vector<8x1xf32>
    %30 = vector.broadcast %22 : vector<8x1xf32> to vector<8x32xf32>
    %31 = arith.subf %18, %30 : vector<8x32xf32>
    %cst_16 = arith.constant 9.99999974E-6 : f32
    %32 = vector.broadcast %cst_16 : f32 to vector<8x1xf32>
    %33 = arith.addf %29, %32 : vector<8x1xf32>
    %34 = math.rsqrt %33 : vector<8x1xf32>
    %35 = vector.broadcast %34 : vector<8x1xf32> to vector<8x32xf32>
    %36 = arith.mulf %31, %35 : vector<8x32xf32>
    %c0_17 = arith.constant 0 : index
    %c0_18 = arith.constant 0 : index
    %37 = vector.load %arg6[%c0_17, %c0_18] : memref<1x32xf32, #tpu.memory_space<vmem>>, vector<1x32xf32>
    %38 = vector.broadcast %37 : vector<1x32xf32> to vector<8x32xf32>
    %39 = arith.mulf %36, %38 : vector<8x32xf32>
    %c0_19 = arith.constant 0 : index
    %c0_20 = arith.constant 0 : index
    %40 = vector.load %arg7[%c0_19, %c0_20] : memref<1x32xf32, #tpu.memory_space<vmem>>, vector<1x32xf32>
    %41 = vector.broadcast %40 : vector<1x32xf32> to vector<8x32xf32>
    %42 = arith.addf %39, %41 : vector<8x32xf32>
    %c0_21 = arith.constant 0 : index
    %c0_22 = arith.constant 0 : index
    %c0_23 = arith.constant 0 : index
    %43 = vector.load %arg8[%c0_21, %c0_22, %c0_23] : memref<1x8x32xf32, #tpu.memory_space<vmem>>, vector<1x8x32xf32>
    %44 = vector.shape_cast %43 : vector<1x8x32xf32> to vector<8x32xf32>
    %45 = vector.shape_cast %42 : vector<8x32xf32> to vector<1x8x32xf32>
    tpu.vector_store %arg8[%c0_21, %c0_22, %c0_23], %45 {strides = array<i32>} : memref<1x8x32xf32, #tpu.memory_space<vmem>>, vector<1x8x32xf32>,
    return
  }
  func.func @transform_0(%arg0: i32) -> (i32, i32, i32) {
    %c0_i32 = arith.constant 0 : i32
    %c0_i32_0 = arith.constant 0 : i32
    %c0_i32_1 = arith.constant 0 : i32
    return %arg0, %c0_i32, %c0_i32_0 : i32, i32, i32
  }
  func.func @transform_1(%arg0: i32) -> (i32, i32) {
    %c0_i32 = arith.constant 0 : i32
    %c0_i32_0 = arith.constant 0 : i32
    %c0_i32_1 = arith.constant 0 : i32
    return %c0_i32, %c0_i32_0 : i32, i32
  }
  func.func @transform_2(%arg0: i32) -> (i32, i32) {
    %c0_i32 = arith.constant 0 : i32
    %c0_i32_0 = arith.constant 0 : i32
    %c0_i32_1 = arith.constant 0 : i32
    return %c0_i32, %c0_i32_0 : i32, i32
  }
  func.func @transform_3(%arg0: i32) -> (i32, i32) {
    %c0_i32 = arith.constant 0 : i32
    %c0_i32_0 = arith.constant 0 : i32
    %c0_i32_1 = arith.constant 0 : i32
    return %c0_i32, %c0_i32_0 : i32, i32
  }
  func.func @transform_4(%arg0: i32) -> (i32, i32) {
    %c0_i32 = arith.constant 0 : i32
    %c0_i32_0 = arith.constant 0 : i32
    %c0_i32_1 = arith.constant 0 : i32
    return %c0_i32, %c0_i32_0 : i32, i32
  }
  func.func @transform_5(%arg0: i32) -> (i32, i32) {
    %c0_i32 = arith.constant 0 : i32
    %c0_i32_0 = arith.constant 0 : i32
    %c0_i32_1 = arith.constant 0 : i32
    return %c0_i32, %c0_i32_0 : i32, i32
  }
  func.func @transform_6(%arg0: i32) -> (i32, i32) {
    %c0_i32 = arith.constant 0 : i32
    %c0_i32_0 = arith.constant 0 : i32
    %c0_i32_1 = arith.constant 0 : i32
    return %c0_i32, %c0_i32_0 : i32, i32
  }
  func.func @transform_7(%arg0: i32) -> (i32, i32, i32) {
    %c0_i32 = arith.constant 0 : i32
    %c0_i32_0 = arith.constant 0 : i32
    %c0_i32_1 = arith.constant 0 : i32
    return %arg0, %c0_i32, %c0_i32_0 : i32, i32, i32
  }
}

module attributes {stable_mosaic.version = 11 : i64} {
  func.func @_attn_ln_kernel(%arg0: i32, %arg1: memref<1x8x32xf32, #tpu.memory_space<vmem>>, %arg2: memref<1x16x32xf32, #tpu.memory_space<vmem>>, %arg3: memref<1x16x32xf32, #tpu.memory_space<vmem>>, %arg4: memref<1x8x32xf32, #tpu.memory_space<vmem>>, %arg5: memref<32x96xf32, #tpu.memory_space<vmem>>, %arg6: memref<1x96xf32, #tpu.memory_space<vmem>>, %arg7: memref<32x32xf32, #tpu.memory_space<vmem>>, %arg8: memref<1x32xf32, #tpu.memory_space<vmem>>, %arg9: memref<1x32xf32, #tpu.memory_space<vmem>>, %arg10: memref<1x32xf32, #tpu.memory_space<vmem>>, %arg11: memref<1x1x16xf32, #tpu.memory_space<vmem>>, %arg12: memref<1x8x32xf32, #tpu.memory_space<vmem>>) attributes {dimension_semantics = [#tpu.dimension_semantics<parallel>], iteration_bounds = array<i64: 2>, scalar_prefetch = 0 : i64, scratch_operands = 0 : i64, tpu.core_type = #tpu.core_type<tc>, window_params = [{transform_indices = @transform_0, window_bounds = array<i64: 1, 8, 32>}, {transform_indices = @transform_1, window_bounds = array<i64: 1, 16, 32>}, {transform_indices = @transform_2, window_bounds = array<i64: 1, 16, 32>}, {transform_indices = @transform_3, window_bounds = array<i64: 1, 8, 32>}, {pipeline_mode = #tpu.pipeline_mode<synchronous>, transform_indices = @transform_4, window_bounds = array<i64: 32, 96>}, {pipeline_mode = #tpu.pipeline_mode<synchronous>, transform_indices = @transform_5, window_bounds = array<i64: 1, 96>}, {pipeline_mode = #tpu.pipeline_mode<synchronous>, transform_indices = @transform_6, window_bounds = array<i64: 32, 32>}, {pipeline_mode = #tpu.pipeline_mode<synchronous>, transform_indices = @transform_7, window_bounds = array<i64: 1, 32>}, {pipeline_mode = #tpu.pipeline_mode<synchronous>, transform_indices = @transform_8, window_bounds = array<i64: 1, 32>}, {pipeline_mode = #tpu.pipeline_mode<synchronous>, transform_indices = @transform_9, window_bounds = array<i64: 1, 32>}, {transform_indices = @transform_10, window_bounds = array<i64: 1, 1, 16>}, {transform_indices = @transform_11, window_bounds = array<i64: 1, 8, 32>}]} {
    %c0 = arith.constant 0 : index
    %c0_0 = arith.constant 0 : index
    %0 = vector.load %arg5[%c0, %c0_0] : memref<32x96xf32, #tpu.memory_space<vmem>>, vector<32x96xf32>
    %1 = arith.truncf %0 : vector<32x96xf32> to vector<32x96xbf16>
    %c0_1 = arith.constant 0 : index
    %c0_2 = arith.constant 0 : index
    %2 = vector.load %arg6[%c0_1, %c0_2] : memref<1x96xf32, #tpu.memory_space<vmem>>, vector<1x96xf32>
    %c0_3 = arith.constant 0 : index
    %c0_4 = arith.constant 0 : index
    %c0_5 = arith.constant 0 : index
    %3 = vector.load %arg1[%c0_3, %c0_4, %c0_5] : memref<1x8x32xf32, #tpu.memory_space<vmem>>, vector<1x8x32xf32>
    %4 = vector.shape_cast %3 : vector<1x8x32xf32> to vector<8x32xf32>
    %5 = arith.truncf %4 : vector<8x32xf32> to vector<8x32xbf16>
    %c0_6 = arith.constant 0 : index
    %c0_7 = arith.constant 0 : index
    %c0_8 = arith.constant 0 : index
    %6 = vector.load %arg3[%c0_6, %c0_7, %c0_8] : memref<1x16x32xf32, #tpu.memory_space<vmem>>, vector<1x16x32xf32>
    %7 = vector.shape_cast %6 : vector<1x16x32xf32> to vector<16x32xf32>
    %8 = arith.truncf %7 : vector<16x32xf32> to vector<16x32xbf16>
    %c0_9 = arith.constant 0 : index
    %c0_10 = arith.constant 0 : index
    %c0_11 = arith.constant 0 : index
    %9 = vector.load %arg2[%c0_9, %c0_10, %c0_11] : memref<1x16x32xf32, #tpu.memory_space<vmem>>, vector<1x16x32xf32>
    %10 = vector.shape_cast %9 : vector<1x16x32xf32> to vector<16x32xf32>
    %11 = arith.truncf %10 : vector<16x32xf32> to vector<16x32xbf16>
    %12 = vector.extract_strided_slice %1 {offsets = [0, 0], sizes = [32, 32], strides = [1, 1]} : vector<32x96xbf16> to vector<32x32xbf16>
    %cst = arith.constant dense<0.000000e+00> : vector<8x32xf32>
    %13 = tpu.matmul %5, %12, %cst {dimension_numbers = #tpu.dot_dimension_numbers<[1], [0], [0], [1], [0, 0, 1, 1], [], []>} : vector<8x32xbf16>, vector<32x32xbf16>, vector<8x32xf32> -> vector<8x32xf32>
    %14 = vector.extract_strided_slice %2 {offsets = [0, 0], sizes = [1, 32], strides = [1, 1]} : vector<1x96xf32> to vector<1x32xf32>
    %15 = vector.broadcast %14 : vector<1x32xf32> to vector<8x32xf32>
    %16 = arith.addf %13, %15 : vector<8x32xf32>
    %17 = vector.extract_strided_slice %1 {offsets = [0, 32], sizes = [32, 32], strides = [1, 1]} : vector<32x96xbf16> to vector<32x32xbf16>
    %cst_12 = arith.constant dense<0.000000e+00> : vector<16x32xf32>
    %18 = tpu.matmul %11, %17, %cst_12 {dimension_numbers = #tpu.dot_dimension_numbers<[1], [0], [0], [1], [0, 0, 1, 1], [], []>} : vector<16x32xbf16>, vector<32x32xbf16>, vector<16x32xf32> -> vector<16x32xf32>
    %19 = vector.extract_strided_slice %2 {offsets = [0, 32], sizes = [1, 32], strides = [1, 1]} : vector<1x96xf32> to vector<1x32xf32>
    %20 = vector.broadcast %19 : vector<1x32xf32> to vector<16x32xf32>
    %21 = arith.addf %18, %20 : vector<16x32xf32>
    %22 = vector.extract_strided_slice %1 {offsets = [0, 64], sizes = [32, 32], strides = [1, 1]} : vector<32x96xbf16> to vector<32x32xbf16>
    %cst_13 = arith.constant dense<0.000000e+00> : vector<16x32xf32>
    %23 = tpu.matmul %8, %22, %cst_13 {dimension_numbers = #tpu.dot_dimension_numbers<[1], [0], [0], [1], [0, 0, 1, 1], [], []>} : vector<16x32xbf16>, vector<32x32xbf16>, vector<16x32xf32> -> vector<16x32xf32>
    %24 = vector.extract_strided_slice %2 {offsets = [0, 64], sizes = [1, 32], strides = [1, 1]} : vector<1x96xf32> to vector<1x32xf32>
    %25 = vector.broadcast %24 : vector<1x32xf32> to vector<16x32xf32>
    %26 = arith.addf %23, %25 : vector<16x32xf32>
    %c0_14 = arith.constant 0 : index
    %c0_15 = arith.constant 0 : index
    %c0_16 = arith.constant 0 : index
    %27 = vector.load %arg11[%c0_14, %c0_15, %c0_16] : memref<1x1x16xf32, #tpu.memory_space<vmem>>, vector<1x1x16xf32>
    %28 = vector.shape_cast %27 : vector<1x1x16xf32> to vector<1x16xf32>
    %29 = vector.extract_strided_slice %16 {offsets = [0, 0], sizes = [8, 8], strides = [1, 1]} : vector<8x32xf32> to vector<8x8xf32>
    %30 = vector.extract_strided_slice %21 {offsets = [0, 0], sizes = [16, 8], strides = [1, 1]} : vector<16x32xf32> to vector<16x8xf32>
    %31 = vector.extract_strided_slice %26 {offsets = [0, 0], sizes = [16, 8], strides = [1, 1]} : vector<16x32xf32> to vector<16x8xf32>
    %32 = tpu.transpose %30, [1, 0] : vector<16x8xf32> -> vector<8x16xf32>
    %cst_17 = arith.constant dense<0.000000e+00> : vector<8x16xf32>
    %33 = tpu.matmul %29, %32, %cst_17 {dimension_numbers = #tpu.dot_dimension_numbers<[1], [0], [0], [1], [0, 0, 1, 1], [], []>} : vector<8x8xf32>, vector<8x16xf32>, vector<8x16xf32> -> vector<8x16xf32>
    %cst_18 = arith.constant 0.353553385 : f32
    %34 = vector.broadcast %cst_18 : f32 to vector<8x16xf32>
    %35 = arith.mulf %33, %34 : vector<8x16xf32>
    %36 = vector.broadcast %28 : vector<1x16xf32> to vector<8x16xf32>
    %37 = arith.addf %35, %36 : vector<8x16xf32>
    %cst_19 = arith.constant dense<0xFF800000> : vector<8xf32>
    %38 = vector.multi_reduction <maximumf>, %37, %cst_19 [1] : vector<8x16xf32> to vector<8xf32>
    %39 = vector.shape_cast %38 : vector<8xf32> to vector<8x1xf32>
    %40 = vector.broadcast %39 : vector<8x1xf32> to vector<8x16xf32>
    %41 = arith.subf %37, %40 : vector<8x16xf32>
    %42 = math.exp %41 : vector<8x16xf32>
    %cst_20 = arith.constant dense<0.000000e+00> : vector<8xf32>
    %43 = vector.multi_reduction <add>, %42, %cst_20 [1] : vector<8x16xf32> to vector<8xf32>
    %44 = vector.shape_cast %43 : vector<8xf32> to vector<8x1xf32>
    %45 = tpu.reciprocal %44 {approx = true} : vector<8x1xf32> -> vector<8x1xf32>
    %46 = vector.broadcast %45 : vector<8x1xf32> to vector<8x16xf32>
    %47 = arith.mulf %42, %46 : vector<8x16xf32>
    %48 = arith.truncf %47 : vector<8x16xf32> to vector<8x16xbf16>
    %49 = arith.truncf %31 : vector<16x8xf32> to vector<16x8xbf16>
    %cst_21 = arith.constant dense<0.000000e+00> : vector<8x8xf32>
    %50 = tpu.matmul %48, %49, %cst_21 {dimension_numbers = #tpu.dot_dimension_numbers<[1], [0], [0], [1], [0, 0, 1, 1], [], []>} : vector<8x16xbf16>, vector<16x8xbf16>, vector<8x8xf32> -> vector<8x8xf32>
    %51 = vector.extract_strided_slice %16 {offsets = [0, 8], sizes = [8, 8], strides = [1, 1]} : vector<8x32xf32> to vector<8x8xf32>
    %52 = vector.extract_strided_slice %21 {offsets = [0, 8], sizes = [16, 8], strides = [1, 1]} : vector<16x32xf32> to vector<16x8xf32>
    %53 = vector.extract_strided_slice %26 {offsets = [0, 8], sizes = [16, 8], strides = [1, 1]} : vector<16x32xf32> to vector<16x8xf32>
    %54 = tpu.transpose %52, [1, 0] : vector<16x8xf32> -> vector<8x16xf32>
    %cst_22 = arith.constant dense<0.000000e+00> : vector<8x16xf32>
    %55 = tpu.matmul %51, %54, %cst_22 {dimension_numbers = #tpu.dot_dimension_numbers<[1], [0], [0], [1], [0, 0, 1, 1], [], []>} : vector<8x8xf32>, vector<8x16xf32>, vector<8x16xf32> -> vector<8x16xf32>
    %cst_23 = arith.constant 0.353553385 : f32
    %56 = vector.broadcast %cst_23 : f32 to vector<8x16xf32>
    %57 = arith.mulf %55, %56 : vector<8x16xf32>
    %58 = vector.broadcast %28 : vector<1x16xf32> to vector<8x16xf32>
    %59 = arith.addf %57, %58 : vector<8x16xf32>
    %cst_24 = arith.constant dense<0xFF800000> : vector<8xf32>
    %60 = vector.multi_reduction <maximumf>, %59, %cst_24 [1] : vector<8x16xf32> to vector<8xf32>
    %61 = vector.shape_cast %60 : vector<8xf32> to vector<8x1xf32>
    %62 = vector.broadcast %61 : vector<8x1xf32> to vector<8x16xf32>
    %63 = arith.subf %59, %62 : vector<8x16xf32>
    %64 = math.exp %63 : vector<8x16xf32>
    %cst_25 = arith.constant dense<0.000000e+00> : vector<8xf32>
    %65 = vector.multi_reduction <add>, %64, %cst_25 [1] : vector<8x16xf32> to vector<8xf32>
    %66 = vector.shape_cast %65 : vector<8xf32> to vector<8x1xf32>
    %67 = tpu.reciprocal %66 {approx = true} : vector<8x1xf32> -> vector<8x1xf32>
    %68 = vector.broadcast %67 : vector<8x1xf32> to vector<8x16xf32>
    %69 = arith.mulf %64, %68 : vector<8x16xf32>
    %70 = arith.truncf %69 : vector<8x16xf32> to vector<8x16xbf16>
    %71 = arith.truncf %53 : vector<16x8xf32> to vector<16x8xbf16>
    %cst_26 = arith.constant dense<0.000000e+00> : vector<8x8xf32>
    %72 = tpu.matmul %70, %71, %cst_26 {dimension_numbers = #tpu.dot_dimension_numbers<[1], [0], [0], [1], [0, 0, 1, 1], [], []>} : vector<8x16xbf16>, vector<16x8xbf16>, vector<8x8xf32> -> vector<8x8xf32>
    %73 = vector.extract_strided_slice %16 {offsets = [0, 16], sizes = [8, 8], strides = [1, 1]} : vector<8x32xf32> to vector<8x8xf32>
    %74 = vector.extract_strided_slice %21 {offsets = [0, 16], sizes = [16, 8], strides = [1, 1]} : vector<16x32xf32> to vector<16x8xf32>
    %75 = vector.extract_strided_slice %26 {offsets = [0, 16], sizes = [16, 8], strides = [1, 1]} : vector<16x32xf32> to vector<16x8xf32>
    %76 = tpu.transpose %74, [1, 0] : vector<16x8xf32> -> vector<8x16xf32>
    %cst_27 = arith.constant dense<0.000000e+00> : vector<8x16xf32>
    %77 = tpu.matmul %73, %76, %cst_27 {dimension_numbers = #tpu.dot_dimension_numbers<[1], [0], [0], [1], [0, 0, 1, 1], [], []>} : vector<8x8xf32>, vector<8x16xf32>, vector<8x16xf32> -> vector<8x16xf32>
    %cst_28 = arith.constant 0.353553385 : f32
    %78 = vector.broadcast %cst_28 : f32 to vector<8x16xf32>
    %79 = arith.mulf %77, %78 : vector<8x16xf32>
    %80 = vector.broadcast %28 : vector<1x16xf32> to vector<8x16xf32>
    %81 = arith.addf %79, %80 : vector<8x16xf32>
    %cst_29 = arith.constant dense<0xFF800000> : vector<8xf32>
    %82 = vector.multi_reduction <maximumf>, %81, %cst_29 [1] : vector<8x16xf32> to vector<8xf32>
    %83 = vector.shape_cast %82 : vector<8xf32> to vector<8x1xf32>
    %84 = vector.broadcast %83 : vector<8x1xf32> to vector<8x16xf32>
    %85 = arith.subf %81, %84 : vector<8x16xf32>
    %86 = math.exp %85 : vector<8x16xf32>
    %cst_30 = arith.constant dense<0.000000e+00> : vector<8xf32>
    %87 = vector.multi_reduction <add>, %86, %cst_30 [1] : vector<8x16xf32> to vector<8xf32>
    %88 = vector.shape_cast %87 : vector<8xf32> to vector<8x1xf32>
    %89 = tpu.reciprocal %88 {approx = true} : vector<8x1xf32> -> vector<8x1xf32>
    %90 = vector.broadcast %89 : vector<8x1xf32> to vector<8x16xf32>
    %91 = arith.mulf %86, %90 : vector<8x16xf32>
    %92 = arith.truncf %91 : vector<8x16xf32> to vector<8x16xbf16>
    %93 = arith.truncf %75 : vector<16x8xf32> to vector<16x8xbf16>
    %cst_31 = arith.constant dense<0.000000e+00> : vector<8x8xf32>
    %94 = tpu.matmul %92, %93, %cst_31 {dimension_numbers = #tpu.dot_dimension_numbers<[1], [0], [0], [1], [0, 0, 1, 1], [], []>} : vector<8x16xbf16>, vector<16x8xbf16>, vector<8x8xf32> -> vector<8x8xf32>
    %95 = vector.extract_strided_slice %16 {offsets = [0, 24], sizes = [8, 8], strides = [1, 1]} : vector<8x32xf32> to vector<8x8xf32>
    %96 = vector.extract_strided_slice %21 {offsets = [0, 24], sizes = [16, 8], strides = [1, 1]} : vector<16x32xf32> to vector<16x8xf32>
    %97 = vector.extract_strided_slice %26 {offsets = [0, 24], sizes = [16, 8], strides = [1, 1]} : vector<16x32xf32> to vector<16x8xf32>
    %98 = tpu.transpose %96, [1, 0] : vector<16x8xf32> -> vector<8x16xf32>
    %cst_32 = arith.constant dense<0.000000e+00> : vector<8x16xf32>
    %99 = tpu.matmul %95, %98, %cst_32 {dimension_numbers = #tpu.dot_dimension_numbers<[1], [0], [0], [1], [0, 0, 1, 1], [], []>} : vector<8x8xf32>, vector<8x16xf32>, vector<8x16xf32> -> vector<8x16xf32>
    %cst_33 = arith.constant 0.353553385 : f32
    %100 = vector.broadcast %cst_33 : f32 to vector<8x16xf32>
    %101 = arith.mulf %99, %100 : vector<8x16xf32>
    %102 = vector.broadcast %28 : vector<1x16xf32> to vector<8x16xf32>
    %103 = arith.addf %101, %102 : vector<8x16xf32>
    %cst_34 = arith.constant dense<0xFF800000> : vector<8xf32>
    %104 = vector.multi_reduction <maximumf>, %103, %cst_34 [1] : vector<8x16xf32> to vector<8xf32>
    %105 = vector.shape_cast %104 : vector<8xf32> to vector<8x1xf32>
    %106 = vector.broadcast %105 : vector<8x1xf32> to vector<8x16xf32>
    %107 = arith.subf %103, %106 : vector<8x16xf32>
    %108 = math.exp %107 : vector<8x16xf32>
    %cst_35 = arith.constant dense<0.000000e+00> : vector<8xf32>
    %109 = vector.multi_reduction <add>, %108, %cst_35 [1] : vector<8x16xf32> to vector<8xf32>
    %110 = vector.shape_cast %109 : vector<8xf32> to vector<8x1xf32>
    %111 = tpu.reciprocal %110 {approx = true} : vector<8x1xf32> -> vector<8x1xf32>
    %112 = vector.broadcast %111 : vector<8x1xf32> to vector<8x16xf32>
    %113 = arith.mulf %108, %112 : vector<8x16xf32>
    %114 = arith.truncf %113 : vector<8x16xf32> to vector<8x16xbf16>
    %115 = arith.truncf %97 : vector<16x8xf32> to vector<16x8xbf16>
    %cst_36 = arith.constant dense<0.000000e+00> : vector<8x8xf32>
    %116 = tpu.matmul %114, %115, %cst_36 {dimension_numbers = #tpu.dot_dimension_numbers<[1], [0], [0], [1], [0, 0, 1, 1], [], []>} : vector<8x16xbf16>, vector<16x8xbf16>, vector<8x8xf32> -> vector<8x8xf32>
    %117 = tpu.concatenate %50, %72, %94, %116 in 1 : vector<8x8xf32>, vector<8x8xf32>, vector<8x8xf32>, vector<8x8xf32> -> vector<8x32xf32>
    %118 = arith.truncf %117 : vector<8x32xf32> to vector<8x32xbf16>
    %c0_37 = arith.constant 0 : index
    %c0_38 = arith.constant 0 : index
    %119 = vector.load %arg7[%c0_37, %c0_38] : memref<32x32xf32, #tpu.memory_space<vmem>>, vector<32x32xf32>
    %120 = arith.truncf %119 : vector<32x32xf32> to vector<32x32xbf16>
    %cst_39 = arith.constant dense<0.000000e+00> : vector<8x32xf32>
    %121 = tpu.matmul %118, %120, %cst_39 {dimension_numbers = #tpu.dot_dimension_numbers<[1], [0], [0], [1], [0, 0, 1, 1], [], []>} : vector<8x32xbf16>, vector<32x32xbf16>, vector<8x32xf32> -> vector<8x32xf32>
    %c0_40 = arith.constant 0 : index
    %c0_41 = arith.constant 0 : index
    %122 = vector.load %arg8[%c0_40, %c0_41] : memref<1x32xf32, #tpu.memory_space<vmem>>, vector<1x32xf32>
    %123 = vector.broadcast %122 : vector<1x32xf32> to vector<8x32xf32>
    %124 = arith.addf %121, %123 : vector<8x32xf32>
    %c0_42 = arith.constant 0 : index
    %c0_43 = arith.constant 0 : index
    %c0_44 = arith.constant 0 : index
    %125 = vector.load %arg4[%c0_42, %c0_43, %c0_44] : memref<1x8x32xf32, #tpu.memory_space<vmem>>, vector<1x8x32xf32>
    %126 = vector.shape_cast %125 : vector<1x8x32xf32> to vector<8x32xf32>
    %127 = arith.addf %126, %124 : vector<8x32xf32>
    %cst_45 = arith.constant dense<0.000000e+00> : vector<8xf32>
    %128 = vector.multi_reduction <add>, %127, %cst_45 [1] : vector<8x32xf32> to vector<8xf32>
    %129 = vector.shape_cast %128 : vector<8xf32> to vector<8x1xf32>
    %cst_46 = arith.constant 3.200000e+01 : f32
    %130 = vector.broadcast %cst_46 : f32 to vector<8x1xf32>
    %131 = arith.divf %129, %130 : vector<8x1xf32>
    %132 = vector.broadcast %131 : vector<8x1xf32> to vector<8x32xf32>
    %133 = arith.subf %127, %132 : vector<8x32xf32>
    %134 = arith.mulf %133, %133 : vector<8x32xf32>
    %cst_47 = arith.constant dense<0.000000e+00> : vector<8xf32>
    %135 = vector.multi_reduction <add>, %134, %cst_47 [1] : vector<8x32xf32> to vector<8xf32>
    %136 = vector.shape_cast %135 : vector<8xf32> to vector<8x1xf32>
    %cst_48 = arith.constant 3.200000e+01 : f32
    %137 = vector.broadcast %cst_48 : f32 to vector<8x1xf32>
    %138 = arith.divf %136, %137 : vector<8x1xf32>
    %139 = vector.broadcast %131 : vector<8x1xf32> to vector<8x32xf32>
    %140 = arith.subf %127, %139 : vector<8x32xf32>
    %cst_49 = arith.constant 9.99999974E-6 : f32
    %141 = vector.broadcast %cst_49 : f32 to vector<8x1xf32>
    %142 = arith.addf %138, %141 : vector<8x1xf32>
    %143 = math.rsqrt %142 : vector<8x1xf32>
    %144 = vector.broadcast %143 : vector<8x1xf32> to vector<8x32xf32>
    %145 = arith.mulf %140, %144 : vector<8x32xf32>
    %c0_50 = arith.constant 0 : index
    %c0_51 = arith.constant 0 : index
    %146 = vector.load %arg9[%c0_50, %c0_51] : memref<1x32xf32, #tpu.memory_space<vmem>>, vector<1x32xf32>
    %147 = vector.broadcast %146 : vector<1x32xf32> to vector<8x32xf32>
    %148 = arith.mulf %145, %147 : vector<8x32xf32>
    %c0_52 = arith.constant 0 : index
    %c0_53 = arith.constant 0 : index
    %149 = vector.load %arg10[%c0_52, %c0_53] : memref<1x32xf32, #tpu.memory_space<vmem>>, vector<1x32xf32>
    %150 = vector.broadcast %149 : vector<1x32xf32> to vector<8x32xf32>
    %151 = arith.addf %148, %150 : vector<8x32xf32>
    %c0_54 = arith.constant 0 : index
    %c0_55 = arith.constant 0 : index
    %c0_56 = arith.constant 0 : index
    %152 = vector.load %arg12[%c0_54, %c0_55, %c0_56] : memref<1x8x32xf32, #tpu.memory_space<vmem>>, vector<1x8x32xf32>
    %153 = vector.shape_cast %152 : vector<1x8x32xf32> to vector<8x32xf32>
    %154 = vector.shape_cast %151 : vector<8x32xf32> to vector<1x8x32xf32>
    tpu.vector_store %arg12[%c0_54, %c0_55, %c0_56], %154 {strides = array<i32>} : memref<1x8x32xf32, #tpu.memory_space<vmem>>, vector<1x8x32xf32>,
    return
  }
  func.func @transform_0(%arg0: i32) -> (i32, i32, i32) {
    %c0_i32 = arith.constant 0 : i32
    %c0_i32_0 = arith.constant 0 : i32
    %c0_i32_1 = arith.constant 0 : i32
    return %arg0, %c0_i32, %c0_i32_0 : i32, i32, i32
  }
  func.func @transform_1(%arg0: i32) -> (i32, i32, i32) {
    %c0_i32 = arith.constant 0 : i32
    %c0_i32_0 = arith.constant 0 : i32
    %c0_i32_1 = arith.constant 0 : i32
    return %arg0, %c0_i32, %c0_i32_0 : i32, i32, i32
  }
  func.func @transform_2(%arg0: i32) -> (i32, i32, i32) {
    %c0_i32 = arith.constant 0 : i32
    %c0_i32_0 = arith.constant 0 : i32
    %c0_i32_1 = arith.constant 0 : i32
    return %arg0, %c0_i32, %c0_i32_0 : i32, i32, i32
  }
  func.func @transform_3(%arg0: i32) -> (i32, i32, i32) {
    %c0_i32 = arith.constant 0 : i32
    %c0_i32_0 = arith.constant 0 : i32
    %c0_i32_1 = arith.constant 0 : i32
    return %arg0, %c0_i32, %c0_i32_0 : i32, i32, i32
  }
  func.func @transform_4(%arg0: i32) -> (i32, i32) {
    %c0_i32 = arith.constant 0 : i32
    %c0_i32_0 = arith.constant 0 : i32
    %c0_i32_1 = arith.constant 0 : i32
    return %c0_i32, %c0_i32_0 : i32, i32
  }
  func.func @transform_5(%arg0: i32) -> (i32, i32) {
    %c0_i32 = arith.constant 0 : i32
    %c0_i32_0 = arith.constant 0 : i32
    %c0_i32_1 = arith.constant 0 : i32
    return %c0_i32, %c0_i32_0 : i32, i32
  }
  func.func @transform_6(%arg0: i32) -> (i32, i32) {
    %c0_i32 = arith.constant 0 : i32
    %c0_i32_0 = arith.constant 0 : i32
    %c0_i32_1 = arith.constant 0 : i32
    return %c0_i32, %c0_i32_0 : i32, i32
  }
  func.func @transform_7(%arg0: i32) -> (i32, i32) {
    %c0_i32 = arith.constant 0 : i32
    %c0_i32_0 = arith.constant 0 : i32
    %c0_i32_1 = arith.constant 0 : i32
    return %c0_i32, %c0_i32_0 : i32, i32
  }
  func.func @transform_8(%arg0: i32) -> (i32, i32) {
    %c0_i32 = arith.constant 0 : i32
    %c0_i32_0 = arith.constant 0 : i32
    %c0_i32_1 = arith.constant 0 : i32
    return %c0_i32, %c0_i32_0 : i32, i32
  }
  func.func @transform_9(%arg0: i32) -> (i32, i32) {
    %c0_i32 = arith.constant 0 : i32
    %c0_i32_0 = arith.constant 0 : i32
    %c0_i32_1 = arith.constant 0 : i32
    return %c0_i32, %c0_i32_0 : i32, i32
  }
  func.func @transform_10(%arg0: i32) -> (i32, i32, i32) {
    %c0_i32 = arith.constant 0 : i32
    %c0_i32_0 = arith.constant 0 : i32
    %c0_i32_1 = arith.constant 0 : i32
    return %arg0, %c0_i32, %c0_i32_0 : i32, i32, i32
  }
  func.func @transform_11(%arg0: i32) -> (i32, i32, i32) {
    %c0_i32 = arith.constant 0 : i32
    %c0_i32_0 = arith.constant 0 : i32
    %c0_i32_1 = arith.constant 0 : i32
    return %arg0, %c0_i32, %c0_i32_0 : i32, i32, i32
  }
}

module attributes {stable_mosaic.version = 11 : i64} {
  func.func @_attn_ln_kernel(%arg0: i32, %arg1: memref<1x8x32xf32, #tpu.memory_space<vmem>>, %arg2: memref<1x8x32xf32, #tpu.memory_space<vmem>>, %arg3: memref<32x96xf32, #tpu.memory_space<vmem>>, %arg4: memref<1x96xf32, #tpu.memory_space<vmem>>, %arg5: memref<32x32xf32, #tpu.memory_space<vmem>>, %arg6: memref<1x32xf32, #tpu.memory_space<vmem>>, %arg7: memref<1x32xf32, #tpu.memory_space<vmem>>, %arg8: memref<1x32xf32, #tpu.memory_space<vmem>>, %arg9: memref<1x8x32xf32, #tpu.memory_space<vmem>>) attributes {dimension_semantics = [#tpu.dimension_semantics<parallel>], iteration_bounds = array<i64: 2>, scalar_prefetch = 0 : i64, scratch_operands = 0 : i64, tpu.core_type = #tpu.core_type<tc>, window_params = [{transform_indices = @transform_0, window_bounds = array<i64: 1, 8, 32>}, {transform_indices = @transform_1, window_bounds = array<i64: 1, 8, 32>}, {pipeline_mode = #tpu.pipeline_mode<synchronous>, transform_indices = @transform_2, window_bounds = array<i64: 32, 96>}, {pipeline_mode = #tpu.pipeline_mode<synchronous>, transform_indices = @transform_3, window_bounds = array<i64: 1, 96>}, {pipeline_mode = #tpu.pipeline_mode<synchronous>, transform_indices = @transform_4, window_bounds = array<i64: 32, 32>}, {pipeline_mode = #tpu.pipeline_mode<synchronous>, transform_indices = @transform_5, window_bounds = array<i64: 1, 32>}, {pipeline_mode = #tpu.pipeline_mode<synchronous>, transform_indices = @transform_6, window_bounds = array<i64: 1, 32>}, {pipeline_mode = #tpu.pipeline_mode<synchronous>, transform_indices = @transform_7, window_bounds = array<i64: 1, 32>}, {transform_indices = @transform_8, window_bounds = array<i64: 1, 8, 32>}]} {
    %c0 = arith.constant 0 : index
    %c0_0 = arith.constant 0 : index
    %0 = vector.load %arg3[%c0, %c0_0] : memref<32x96xf32, #tpu.memory_space<vmem>>, vector<32x96xf32>
    %1 = arith.truncf %0 : vector<32x96xf32> to vector<32x96xbf16>
    %c0_1 = arith.constant 0 : index
    %c0_2 = arith.constant 0 : index
    %2 = vector.load %arg4[%c0_1, %c0_2] : memref<1x96xf32, #tpu.memory_space<vmem>>, vector<1x96xf32>
    %c0_3 = arith.constant 0 : index
    %c0_4 = arith.constant 0 : index
    %c0_5 = arith.constant 0 : index
    %3 = vector.load %arg1[%c0_3, %c0_4, %c0_5] : memref<1x8x32xf32, #tpu.memory_space<vmem>>, vector<1x8x32xf32>
    %4 = vector.shape_cast %3 : vector<1x8x32xf32> to vector<8x32xf32>
    %5 = arith.truncf %4 : vector<8x32xf32> to vector<8x32xbf16>
    %c0_6 = arith.constant 0 : index
    %c0_7 = arith.constant 0 : index
    %c0_8 = arith.constant 0 : index
    %6 = vector.load %arg2[%c0_6, %c0_7, %c0_8] : memref<1x8x32xf32, #tpu.memory_space<vmem>>, vector<1x8x32xf32>
    %7 = vector.shape_cast %6 : vector<1x8x32xf32> to vector<8x32xf32>
    %8 = arith.truncf %7 : vector<8x32xf32> to vector<8x32xbf16>
    %9 = vector.extract_strided_slice %1 {offsets = [0, 0], sizes = [32, 64], strides = [1, 1]} : vector<32x96xbf16> to vector<32x64xbf16>
    %cst = arith.constant dense<0.000000e+00> : vector<8x64xf32>
    %10 = tpu.matmul %5, %9, %cst {dimension_numbers = #tpu.dot_dimension_numbers<[1], [0], [0], [1], [0, 0, 1, 1], [], []>} : vector<8x32xbf16>, vector<32x64xbf16>, vector<8x64xf32> -> vector<8x64xf32>
    %11 = vector.extract_strided_slice %2 {offsets = [0, 0], sizes = [1, 64], strides = [1, 1]} : vector<1x96xf32> to vector<1x64xf32>
    %12 = vector.broadcast %11 : vector<1x64xf32> to vector<8x64xf32>
    %13 = arith.addf %10, %12 : vector<8x64xf32>
    %14 = vector.extract_strided_slice %13 {offsets = [0, 0], sizes = [8, 32], strides = [1, 1]} : vector<8x64xf32> to vector<8x32xf32>
    %15 = vector.extract_strided_slice %13 {offsets = [0, 32], sizes = [8, 32], strides = [1, 1]} : vector<8x64xf32> to vector<8x32xf32>
    %16 = vector.extract_strided_slice %1 {offsets = [0, 64], sizes = [32, 32], strides = [1, 1]} : vector<32x96xbf16> to vector<32x32xbf16>
    %cst_9 = arith.constant dense<0.000000e+00> : vector<8x32xf32>
    %17 = tpu.matmul %8, %16, %cst_9 {dimension_numbers = #tpu.dot_dimension_numbers<[1], [0], [0], [1], [0, 0, 1, 1], [], []>} : vector<8x32xbf16>, vector<32x32xbf16>, vector<8x32xf32> -> vector<8x32xf32>
    %18 = vector.extract_strided_slice %2 {offsets = [0, 64], sizes = [1, 32], strides = [1, 1]} : vector<1x96xf32> to vector<1x32xf32>
    %19 = vector.broadcast %18 : vector<1x32xf32> to vector<8x32xf32>
    %20 = arith.addf %17, %19 : vector<8x32xf32>
    %21 = vector.extract_strided_slice %14 {offsets = [0, 0], sizes = [8, 8], strides = [1, 1]} : vector<8x32xf32> to vector<8x8xf32>
    %22 = vector.extract_strided_slice %15 {offsets = [0, 0], sizes = [8, 8], strides = [1, 1]} : vector<8x32xf32> to vector<8x8xf32>
    %23 = vector.extract_strided_slice %20 {offsets = [0, 0], sizes = [8, 8], strides = [1, 1]} : vector<8x32xf32> to vector<8x8xf32>
    %24 = tpu.transpose %22, [1, 0] : vector<8x8xf32> -> vector<8x8xf32>
    %cst_10 = arith.constant dense<0.000000e+00> : vector<8x8xf32>
    %25 = tpu.matmul %21, %24, %cst_10 {dimension_numbers = #tpu.dot_dimension_numbers<[1], [0], [0], [1], [0, 0, 1, 1], [], []>} : vector<8x8xf32>, vector<8x8xf32>, vector<8x8xf32> -> vector<8x8xf32>
    %cst_11 = arith.constant 0.353553385 : f32
    %26 = vector.broadcast %cst_11 : f32 to vector<8x8xf32>
    %27 = arith.mulf %25, %26 : vector<8x8xf32>
    %cst_12 = arith.constant dense<0xFF800000> : vector<8xf32>
    %28 = vector.multi_reduction <maximumf>, %27, %cst_12 [1] : vector<8x8xf32> to vector<8xf32>
    %29 = vector.shape_cast %28 : vector<8xf32> to vector<8x1xf32>
    %30 = vector.broadcast %29 : vector<8x1xf32> to vector<8x8xf32>
    %31 = arith.subf %27, %30 : vector<8x8xf32>
    %32 = math.exp %31 : vector<8x8xf32>
    %cst_13 = arith.constant dense<0.000000e+00> : vector<8xf32>
    %33 = vector.multi_reduction <add>, %32, %cst_13 [1] : vector<8x8xf32> to vector<8xf32>
    %34 = vector.shape_cast %33 : vector<8xf32> to vector<8x1xf32>
    %35 = tpu.reciprocal %34 {approx = true} : vector<8x1xf32> -> vector<8x1xf32>
    %36 = vector.broadcast %35 : vector<8x1xf32> to vector<8x8xf32>
    %37 = arith.mulf %32, %36 : vector<8x8xf32>
    %38 = arith.truncf %37 : vector<8x8xf32> to vector<8x8xbf16>
    %39 = arith.truncf %23 : vector<8x8xf32> to vector<8x8xbf16>
    %cst_14 = arith.constant dense<0.000000e+00> : vector<8x8xf32>
    %40 = tpu.matmul %38, %39, %cst_14 {dimension_numbers = #tpu.dot_dimension_numbers<[1], [0], [0], [1], [0, 0, 1, 1], [], []>} : vector<8x8xbf16>, vector<8x8xbf16>, vector<8x8xf32> -> vector<8x8xf32>
    %41 = vector.extract_strided_slice %14 {offsets = [0, 8], sizes = [8, 8], strides = [1, 1]} : vector<8x32xf32> to vector<8x8xf32>
    %42 = vector.extract_strided_slice %15 {offsets = [0, 8], sizes = [8, 8], strides = [1, 1]} : vector<8x32xf32> to vector<8x8xf32>
    %43 = vector.extract_strided_slice %20 {offsets = [0, 8], sizes = [8, 8], strides = [1, 1]} : vector<8x32xf32> to vector<8x8xf32>
    %44 = tpu.transpose %42, [1, 0] : vector<8x8xf32> -> vector<8x8xf32>
    %cst_15 = arith.constant dense<0.000000e+00> : vector<8x8xf32>
    %45 = tpu.matmul %41, %44, %cst_15 {dimension_numbers = #tpu.dot_dimension_numbers<[1], [0], [0], [1], [0, 0, 1, 1], [], []>} : vector<8x8xf32>, vector<8x8xf32>, vector<8x8xf32> -> vector<8x8xf32>
    %cst_16 = arith.constant 0.353553385 : f32
    %46 = vector.broadcast %cst_16 : f32 to vector<8x8xf32>
    %47 = arith.mulf %45, %46 : vector<8x8xf32>
    %cst_17 = arith.constant dense<0xFF800000> : vector<8xf32>
    %48 = vector.multi_reduction <maximumf>, %47, %cst_17 [1] : vector<8x8xf32> to vector<8xf32>
    %49 = vector.shape_cast %48 : vector<8xf32> to vector<8x1xf32>
    %50 = vector.broadcast %49 : vector<8x1xf32> to vector<8x8xf32>
    %51 = arith.subf %47, %50 : vector<8x8xf32>
    %52 = math.exp %51 : vector<8x8xf32>
    %cst_18 = arith.constant dense<0.000000e+00> : vector<8xf32>
    %53 = vector.multi_reduction <add>, %52, %cst_18 [1] : vector<8x8xf32> to vector<8xf32>
    %54 = vector.shape_cast %53 : vector<8xf32> to vector<8x1xf32>
    %55 = tpu.reciprocal %54 {approx = true} : vector<8x1xf32> -> vector<8x1xf32>
    %56 = vector.broadcast %55 : vector<8x1xf32> to vector<8x8xf32>
    %57 = arith.mulf %52, %56 : vector<8x8xf32>
    %58 = arith.truncf %57 : vector<8x8xf32> to vector<8x8xbf16>
    %59 = arith.truncf %43 : vector<8x8xf32> to vector<8x8xbf16>
    %cst_19 = arith.constant dense<0.000000e+00> : vector<8x8xf32>
    %60 = tpu.matmul %58, %59, %cst_19 {dimension_numbers = #tpu.dot_dimension_numbers<[1], [0], [0], [1], [0, 0, 1, 1], [], []>} : vector<8x8xbf16>, vector<8x8xbf16>, vector<8x8xf32> -> vector<8x8xf32>
    %61 = vector.extract_strided_slice %14 {offsets = [0, 16], sizes = [8, 8], strides = [1, 1]} : vector<8x32xf32> to vector<8x8xf32>
    %62 = vector.extract_strided_slice %15 {offsets = [0, 16], sizes = [8, 8], strides = [1, 1]} : vector<8x32xf32> to vector<8x8xf32>
    %63 = vector.extract_strided_slice %20 {offsets = [0, 16], sizes = [8, 8], strides = [1, 1]} : vector<8x32xf32> to vector<8x8xf32>
    %64 = tpu.transpose %62, [1, 0] : vector<8x8xf32> -> vector<8x8xf32>
    %cst_20 = arith.constant dense<0.000000e+00> : vector<8x8xf32>
    %65 = tpu.matmul %61, %64, %cst_20 {dimension_numbers = #tpu.dot_dimension_numbers<[1], [0], [0], [1], [0, 0, 1, 1], [], []>} : vector<8x8xf32>, vector<8x8xf32>, vector<8x8xf32> -> vector<8x8xf32>
    %cst_21 = arith.constant 0.353553385 : f32
    %66 = vector.broadcast %cst_21 : f32 to vector<8x8xf32>
    %67 = arith.mulf %65, %66 : vector<8x8xf32>
    %cst_22 = arith.constant dense<0xFF800000> : vector<8xf32>
    %68 = vector.multi_reduction <maximumf>, %67, %cst_22 [1] : vector<8x8xf32> to vector<8xf32>
    %69 = vector.shape_cast %68 : vector<8xf32> to vector<8x1xf32>
    %70 = vector.broadcast %69 : vector<8x1xf32> to vector<8x8xf32>
    %71 = arith.subf %67, %70 : vector<8x8xf32>
    %72 = math.exp %71 : vector<8x8xf32>
    %cst_23 = arith.constant dense<0.000000e+00> : vector<8xf32>
    %73 = vector.multi_reduction <add>, %72, %cst_23 [1] : vector<8x8xf32> to vector<8xf32>
    %74 = vector.shape_cast %73 : vector<8xf32> to vector<8x1xf32>
    %75 = tpu.reciprocal %74 {approx = true} : vector<8x1xf32> -> vector<8x1xf32>
    %76 = vector.broadcast %75 : vector<8x1xf32> to vector<8x8xf32>
    %77 = arith.mulf %72, %76 : vector<8x8xf32>
    %78 = arith.truncf %77 : vector<8x8xf32> to vector<8x8xbf16>
    %79 = arith.truncf %63 : vector<8x8xf32> to vector<8x8xbf16>
    %cst_24 = arith.constant dense<0.000000e+00> : vector<8x8xf32>
    %80 = tpu.matmul %78, %79, %cst_24 {dimension_numbers = #tpu.dot_dimension_numbers<[1], [0], [0], [1], [0, 0, 1, 1], [], []>} : vector<8x8xbf16>, vector<8x8xbf16>, vector<8x8xf32> -> vector<8x8xf32>
    %81 = vector.extract_strided_slice %14 {offsets = [0, 24], sizes = [8, 8], strides = [1, 1]} : vector<8x32xf32> to vector<8x8xf32>
    %82 = vector.extract_strided_slice %15 {offsets = [0, 24], sizes = [8, 8], strides = [1, 1]} : vector<8x32xf32> to vector<8x8xf32>
    %83 = vector.extract_strided_slice %20 {offsets = [0, 24], sizes = [8, 8], strides = [1, 1]} : vector<8x32xf32> to vector<8x8xf32>
    %84 = tpu.transpose %82, [1, 0] : vector<8x8xf32> -> vector<8x8xf32>
    %cst_25 = arith.constant dense<0.000000e+00> : vector<8x8xf32>
    %85 = tpu.matmul %81, %84, %cst_25 {dimension_numbers = #tpu.dot_dimension_numbers<[1], [0], [0], [1], [0, 0, 1, 1], [], []>} : vector<8x8xf32>, vector<8x8xf32>, vector<8x8xf32> -> vector<8x8xf32>
    %cst_26 = arith.constant 0.353553385 : f32
    %86 = vector.broadcast %cst_26 : f32 to vector<8x8xf32>
    %87 = arith.mulf %85, %86 : vector<8x8xf32>
    %cst_27 = arith.constant dense<0xFF800000> : vector<8xf32>
    %88 = vector.multi_reduction <maximumf>, %87, %cst_27 [1] : vector<8x8xf32> to vector<8xf32>
    %89 = vector.shape_cast %88 : vector<8xf32> to vector<8x1xf32>
    %90 = vector.broadcast %89 : vector<8x1xf32> to vector<8x8xf32>
    %91 = arith.subf %87, %90 : vector<8x8xf32>
    %92 = math.exp %91 : vector<8x8xf32>
    %cst_28 = arith.constant dense<0.000000e+00> : vector<8xf32>
    %93 = vector.multi_reduction <add>, %92, %cst_28 [1] : vector<8x8xf32> to vector<8xf32>
    %94 = vector.shape_cast %93 : vector<8xf32> to vector<8x1xf32>
    %95 = tpu.reciprocal %94 {approx = true} : vector<8x1xf32> -> vector<8x1xf32>
    %96 = vector.broadcast %95 : vector<8x1xf32> to vector<8x8xf32>
    %97 = arith.mulf %92, %96 : vector<8x8xf32>
    %98 = arith.truncf %97 : vector<8x8xf32> to vector<8x8xbf16>
    %99 = arith.truncf %83 : vector<8x8xf32> to vector<8x8xbf16>
    %cst_29 = arith.constant dense<0.000000e+00> : vector<8x8xf32>
    %100 = tpu.matmul %98, %99, %cst_29 {dimension_numbers = #tpu.dot_dimension_numbers<[1], [0], [0], [1], [0, 0, 1, 1], [], []>} : vector<8x8xbf16>, vector<8x8xbf16>, vector<8x8xf32> -> vector<8x8xf32>
    %101 = tpu.concatenate %40, %60, %80, %100 in 1 : vector<8x8xf32>, vector<8x8xf32>, vector<8x8xf32>, vector<8x8xf32> -> vector<8x32xf32>
    %102 = arith.truncf %101 : vector<8x32xf32> to vector<8x32xbf16>
    %c0_30 = arith.constant 0 : index
    %c0_31 = arith.constant 0 : index
    %103 = vector.load %arg5[%c0_30, %c0_31] : memref<32x32xf32, #tpu.memory_space<vmem>>, vector<32x32xf32>
    %104 = arith.truncf %103 : vector<32x32xf32> to vector<32x32xbf16>
    %cst_32 = arith.constant dense<0.000000e+00> : vector<8x32xf32>
    %105 = tpu.matmul %102, %104, %cst_32 {dimension_numbers = #tpu.dot_dimension_numbers<[1], [0], [0], [1], [0, 0, 1, 1], [], []>} : vector<8x32xbf16>, vector<32x32xbf16>, vector<8x32xf32> -> vector<8x32xf32>
    %c0_33 = arith.constant 0 : index
    %c0_34 = arith.constant 0 : index
    %106 = vector.load %arg6[%c0_33, %c0_34] : memref<1x32xf32, #tpu.memory_space<vmem>>, vector<1x32xf32>
    %107 = vector.broadcast %106 : vector<1x32xf32> to vector<8x32xf32>
    %108 = arith.addf %105, %107 : vector<8x32xf32>
    %c0_35 = arith.constant 0 : index
    %c0_36 = arith.constant 0 : index
    %c0_37 = arith.constant 0 : index
    %109 = vector.load %arg2[%c0_35, %c0_36, %c0_37] : memref<1x8x32xf32, #tpu.memory_space<vmem>>, vector<1x8x32xf32>
    %110 = vector.shape_cast %109 : vector<1x8x32xf32> to vector<8x32xf32>
    %111 = arith.addf %110, %108 : vector<8x32xf32>
    %cst_38 = arith.constant dense<0.000000e+00> : vector<8xf32>
    %112 = vector.multi_reduction <add>, %111, %cst_38 [1] : vector<8x32xf32> to vector<8xf32>
    %113 = vector.shape_cast %112 : vector<8xf32> to vector<8x1xf32>
    %cst_39 = arith.constant 3.200000e+01 : f32
    %114 = vector.broadcast %cst_39 : f32 to vector<8x1xf32>
    %115 = arith.divf %113, %114 : vector<8x1xf32>
    %116 = vector.broadcast %115 : vector<8x1xf32> to vector<8x32xf32>
    %117 = arith.subf %111, %116 : vector<8x32xf32>
    %118 = arith.mulf %117, %117 : vector<8x32xf32>
    %cst_40 = arith.constant dense<0.000000e+00> : vector<8xf32>
    %119 = vector.multi_reduction <add>, %118, %cst_40 [1] : vector<8x32xf32> to vector<8xf32>
    %120 = vector.shape_cast %119 : vector<8xf32> to vector<8x1xf32>
    %cst_41 = arith.constant 3.200000e+01 : f32
    %121 = vector.broadcast %cst_41 : f32 to vector<8x1xf32>
    %122 = arith.divf %120, %121 : vector<8x1xf32>
    %123 = vector.broadcast %115 : vector<8x1xf32> to vector<8x32xf32>
    %124 = arith.subf %111, %123 : vector<8x32xf32>
    %cst_42 = arith.constant 9.99999974E-6 : f32
    %125 = vector.broadcast %cst_42 : f32 to vector<8x1xf32>
    %126 = arith.addf %122, %125 : vector<8x1xf32>
    %127 = math.rsqrt %126 : vector<8x1xf32>
    %128 = vector.broadcast %127 : vector<8x1xf32> to vector<8x32xf32>
    %129 = arith.mulf %124, %128 : vector<8x32xf32>
    %c0_43 = arith.constant 0 : index
    %c0_44 = arith.constant 0 : index
    %130 = vector.load %arg7[%c0_43, %c0_44] : memref<1x32xf32, #tpu.memory_space<vmem>>, vector<1x32xf32>
    %131 = vector.broadcast %130 : vector<1x32xf32> to vector<8x32xf32>
    %132 = arith.mulf %129, %131 : vector<8x32xf32>
    %c0_45 = arith.constant 0 : index
    %c0_46 = arith.constant 0 : index
    %133 = vector.load %arg8[%c0_45, %c0_46] : memref<1x32xf32, #tpu.memory_space<vmem>>, vector<1x32xf32>
    %134 = vector.broadcast %133 : vector<1x32xf32> to vector<8x32xf32>
    %135 = arith.addf %132, %134 : vector<8x32xf32>
    %c0_47 = arith.constant 0 : index
    %c0_48 = arith.constant 0 : index
    %c0_49 = arith.constant 0 : index
    %136 = vector.load %arg9[%c0_47, %c0_48, %c0_49] : memref<1x8x32xf32, #tpu.memory_space<vmem>>, vector<1x8x32xf32>
    %137 = vector.shape_cast %136 : vector<1x8x32xf32> to vector<8x32xf32>
    %138 = vector.shape_cast %135 : vector<8x32xf32> to vector<1x8x32xf32>
    tpu.vector_store %arg9[%c0_47, %c0_48, %c0_49], %138 {strides = array<i32>} : memref<1x8x32xf32, #tpu.memory_space<vmem>>, vector<1x8x32xf32>,
    return
  }
  func.func @transform_0(%arg0: i32) -> (i32, i32, i32) {
    %c0_i32 = arith.constant 0 : i32
    %c0_i32_0 = arith.constant 0 : i32
    %c0_i32_1 = arith.constant 0 : i32
    return %arg0, %c0_i32, %c0_i32_0 : i32, i32, i32
  }
  func.func @transform_1(%arg0: i32) -> (i32, i32, i32) {
    %c0_i32 = arith.constant 0 : i32
    %c0_i32_0 = arith.constant 0 : i32
    %c0_i32_1 = arith.constant 0 : i32
    return %arg0, %c0_i32, %c0_i32_0 : i32, i32, i32
  }
  func.func @transform_2(%arg0: i32) -> (i32, i32) {
    %c0_i32 = arith.constant 0 : i32
    %c0_i32_0 = arith.constant 0 : i32
    %c0_i32_1 = arith.constant 0 : i32
    return %c0_i32, %c0_i32_0 : i32, i32
  }
  func.func @transform_3(%arg0: i32) -> (i32, i32) {
    %c0_i32 = arith.constant 0 : i32
    %c0_i32_0 = arith.constant 0 : i32
    %c0_i32_1 = arith.constant 0 : i32
    return %c0_i32, %c0_i32_0 : i32, i32
  }
  func.func @transform_4(%arg0: i32) -> (i32, i32) {
    %c0_i32 = arith.constant 0 : i32
    %c0_i32_0 = arith.constant 0 : i32
    %c0_i32_1 = arith.constant 0 : i32
    return %c0_i32, %c0_i32_0 : i32, i32
  }
  func.func @transform_5(%arg0: i32) -> (i32, i32) {
    %c0_i32 = arith.constant 0 : i32
    %c0_i32_0 = arith.constant 0 : i32
    %c0_i32_1 = arith.constant 0 : i32
    return %c0_i32, %c0_i32_0 : i32, i32
  }
  func.func @transform_6(%arg0: i32) -> (i32, i32) {
    %c0_i32 = arith.constant 0 : i32
    %c0_i32_0 = arith.constant 0 : i32
    %c0_i32_1 = arith.constant 0 : i32
    return %c0_i32, %c0_i32_0 : i32, i32
  }
  func.func @transform_7(%arg0: i32) -> (i32, i32) {
    %c0_i32 = arith.constant 0 : i32
    %c0_i32_0 = arith.constant 0 : i32
    %c0_i32_1 = arith.constant 0 : i32
    return %c0_i32, %c0_i32_0 : i32, i32
  }
  func.func @transform_8(%arg0: i32) -> (i32, i32, i32) {
    %c0_i32 = arith.constant 0 : i32
    %c0_i32_0 = arith.constant 0 : i32
    %c0_i32_1 = arith.constant 0 : i32
    return %arg0, %c0_i32, %c0_i32_0 : i32, i32, i32
  }
}

</mosaic_0001>

<bundles_post_ra>
// kernel: detrx_decoder_forward.8
= control target key start
LH: loop header
LB: loop body
LE: loop exit
PB: predicated region body
PF: predicated region fallthrough
CT: control target
= control target key end

     0   :  { %s608_s24 = smov 0   ;;  %s708_s0 = inlined_call_operand.vmem [shape: f32[2,8,32], index: 0, kind: input, shape index: {}]   ;;  %s709_s1 = inlined_call_operand.vmem [shape: f32[32,128], index: 1, kind: input, shape index: {}]   ;;  %s710_s2 = inlined_call_operand.vmem [shape: f32[1,128], index: 2, kind: input, shape index: {}]   ;;  %s711_s3 = inlined_call_operand.vmem [shape: f32[128,32], index: 3, kind: input, shape index: {}]   ;;  %s712_s4 = inlined_call_operand.vmem [shape: f32[1,32], index: 4, kind: input, shape index: {}, may-alias: {4,6}]   ;;  %s713_s5 = inlined_call_operand.vmem [shape: f32[1,32], index: 5, kind: input, shape index: {}]   ;;  %s714_s6 = inlined_call_operand.vmem [shape: f32[1,32], index: 6, kind: input, shape index: {}, may-alias: {4,6}]   ;;  %s715_s7 = inlined_call_operand.vmem [shape: f32[2,8,32], index: 7, kind: output, shape index: {}]  }
   0x1 LB: > { %s492_s25 = sadd.s32 4294967295, %s564_s24   ;;  %p496_p0 = scmp.ge.s32.totalorder %s564_s24, 1  ;;  %s564_s24 = sphi %s608_s24, %s17_s24  }
   0x2   : > { %p236_p1 = scmp.lt.s32.totalorder %s564_s24, 3 }
   0x4   : > { %p237_p2 = pnand %p496_p0, %p236_p1 }
   0x5   : > { %p266_p3 = scmp.lt.s32.totalorder (!%p237_p2), %s492_s25, 1 }
   0x6   : > { %240 = sbr.rel (%p237_p2) target bundleno = 726 (0x2d6), region = 48 }
   0xb   : > { %v279_v0 = vld [vmem:[%s709_s1 + $0x10] sm:$0xff]  ;;  %v280_v1 = vld [vmem:[%s709_s1 + $0x18] sm:$0xff]  ;;  %v277_v2 = vld [vmem:[%s709_s1] sm:$0xff]  ;;  %v566_v3 = vmov 0.0   ;;  %vm567_vm0 = vmmov 0   ;;  %s717_s25 = smov (!%p266_p3, %s492_s25), 1 }
   0xc   : > { %518 = vmatprep.subr.bf16.mxu0 %v566_v3  ;;  %v282_v4 = vpack.c.bf16 %v280_v1, %v279_v0  ;;  %v278_v5 = vld [vmem:[%s709_s1 + $0x8] sm:$0xff]  ;;  %522 = vmatprep.mubr.msk.bf16.mxu0 %vm567_vm0, %v566_v3  ;;  %v350_v6 = vld [vmem:[%s711_s3 + $0x70] sm:$0xff]  ;;  %v351_v7 = vld [vmem:[%s711_s3 + $0x78] sm:$0xff]  ;;  %s497_s19 = sshll.u32 %s717_s25, 3  ;;  %vm290_vm1 = vcmask 261120  }
   0xd   : > { %526 = vmatprep.subr.bf16.mxu1 %v566_v3  ;;  %v359_v8 = vpack.c.bf16 %v351_v7, %v350_v6  ;;  %v348_v9 = vld [vmem:[%s711_s3 + $0x60] sm:$0xff]  ;;  %v349_v10 = vld [vmem:[%s711_s3 + $0x68] sm:$0xff]  ;;  %542 = vmatprep.mubr.msk.bf16.mxu1 %vm567_vm0, %v566_v3  ;;  %v281_v11 = vpack.c.bf16 %v278_v5, %v277_v2  ;;  %s269_s22 = scalar_lea.vmem %s708_s0, %s497_s19  ;;  %v346_v13 = vld [vmem:[%s711_s3 + $0x50] sm:$0xff]  ;;  %s273_s16 = scalar_lea.vmem %s715_s7, %s497_s19 }
   0xe   : > { %519 = vmatpush3.bf16.msra.mxu0 %v282_v4  ;;  %v358_v12 = vpack.c.bf16 %v349_v10, %v348_v9  ;;  %v347_v14 = vld [vmem:[%s711_s3 + $0x58] sm:$0xff]  ;;  %v275_v15 = vld [vmem:[%s269_s22] sm:$0xff]  ;;  %v345_v19 = vld [vmem:[%s711_s3 + $0x48] sm:$0xff] }
   0xf   : > { %520 = vmatprep.subr.bf16.mxu0 %v566_v3  ;;  %527 = vmatpush3.bf16.msra.mxu1 %v359_v8  ;;  %v276_v16 = vpack.c.bf16 %v275_v15, %v275_v15  ;;  %v357_v17 = vpack.c.bf16 %v347_v14, %v346_v13  ;;  %v344_v18 = vld [vmem:[%s711_s3 + $0x40] sm:$0xff]  ;;  %v342_v21 = vld [vmem:[%s711_s3 + $0x30] sm:$0xff]  ;;  %v343_v22 = vld [vmem:[%s711_s3 + $0x38] sm:$0xff] }
  0x10   : > { %528 = vmatprep.subr.bf16.mxu1 %v566_v3  ;;  %v356_v20 = vpack.c.bf16 %v345_v19, %v344_v18  ;;  %v355_v23 = vpack.c.bf16 %v343_v22, %v342_v21  ;;  %v340_v24 = vld [vmem:[%s711_s3 + $0x20] sm:$0xff]  ;;  %v341_v25 = vld [vmem:[%s711_s3 + $0x28] sm:$0xff]  ;;  %v338_v27 = vld [vmem:[%s711_s3 + $0x10] sm:$0xff] }
  0x11   : > { %v354_v26 = vpack.c.bf16 %v341_v25, %v340_v24  ;;  %v339_v28 = vld [vmem:[%s711_s3 + $0x18] sm:$0xff]  ;;  %v336_v30 = vld [vmem:[%s711_s3] sm:$0xff]  ;;  %v337_v31 = vld [vmem:[%s711_s3 + $0x8] sm:$0xff] }
  0x12   : > { %521 = vmatpush3.bf16.msra.mxu0 %v281_v11  ;;  %v353_v29 = vpack.c.bf16 %v339_v28, %v338_v27  ;;  %v352_v32 = vpack.c.bf16 %v337_v31, %v336_v30  ;;  %v499_v33 = vld [vmem:[%s710_s2] ss:$0 sm:$0xff] }
  0x13   : > { %529 = vmatpush3.bf16.msra.mxu1 %v358_v12  ;;  %v501_v41 = vld [vmem:[%s712_s4] ss:$0 sm:$0xff] }
  0x14   : > { %530 = vmatprep.subr.bf16.mxu1 %v566_v3  ;;  %v502_v58 = vld [vmem:[%s713_s5] ss:$0 sm:$0xff] }
  0x15   : > { %523 = vmatmul.mubr.msk.bf16.vlgmr.msra.gmra.mxu0 %vm290_vm1, %v276_v16  ;;  %v503_v60 = vld [vmem:[%s714_s6] ss:$0 sm:$0xff] }
  0x17   : > { %531 = vmatpush3.bf16.msra.mxu1 %v357_v17 }
  0x18   : > { %532 = vmatprep.subr.bf16.mxu1 %v566_v3 }
  0x1b   : > { %533 = vmatpush3.bf16.msra.mxu1 %v356_v20 }
  0x1c   : > { %534 = vmatprep.subr.bf16.mxu1 %v566_v3 }
  0x1f   : > { %535 = vmatpush3.bf16.msra.mxu1 %v355_v23 }
  0x20   : > { %536 = vmatprep.subr.bf16.mxu1 %v566_v3 }
  0x23   : > { %537 = vmatpush3.bf16.msra.mxu1 %v354_v26 }
  0x24   : > { %538 = vmatprep.subr.bf16.mxu1 %v566_v3 }
  0x27   : > { %539 = vmatpush3.bf16.msra.mxu1 %v353_v29 }
  0x28   : > { %540 = vmatprep.subr.bf16.mxu1 %v566_v3 }
  0x2b   : > { %541 = vmatpush3.bf16.msra.mxu1 %v352_v32 }
  0xd5   : > { %v328_v34 = vpop.f32.mrf.mxu0 }
  0xd6   : > { %v329_v35 = vadd.f32 %v499_v33, %v328_v34 }
  0xd7   : > { %v524_v36 = vpop.f32.mrf.mxu0 }
  0xd8   : > { %v334_v37 = vmax.f32 %v329_v35, 0.0 }
  0xd9   : > { %v331_v38 = vpop.f32.mrf.mxu0 }
  0xda   : > { %v335_v39 = vpack.c.bf16 %v334_v37, %v334_v37 }
  0xdb   : > { %v525_v40 = vpop.f32.mrf.mxu0 }
  0xdc   : > { %543 = vmatmul.mubr.bf16.vlgmr.msra.gmra.mxu1 %v335_v39 }
 0x19c   : > { %v401_v42 = vpop.f32.mrf.mxu1 }
 0x19d   : > { %v402_v43 = vadd.f32 %v501_v41, %v401_v42 }
 0x19e   : > { %v544_v44 = vpop.f32.mrf.mxu1 }
 0x19f   : > { %v407_v45 = vadd.f32 %v402_v43, %v275_v15 }
 0x1a0   : > { %v404_v46 = vpop.f32.mrf.mxu1 }
 0x1a1   : > { %v408_v47 = vsel %vm290_vm1, %v407_v45, 0.0 }
 0x1a2   : > { %409 = vadd.xlane.f32.xlu0 %v408_v47  ;;  %v545_v48 = vpop.f32.mrf.mxu1 }
 0x22b   : > { %v410_v49 = vpop.xlane.xlu0 %409 }
 0x22c   : > { %v412_v50 = vmul.f32 0.03125, %v410_v49 }
 0x22e   : > { %v413_v51 = vsub.f32 %v407_v45, %v412_v50 }
 0x230   : > { %v414_v52 = vmul.f32 %v413_v51, %v413_v51 }
 0x232   : > { %v415_v53 = vsel %vm290_vm1, %v414_v52, 0.0 }
 0x233   : > { %416 = vadd.xlane.f32.xlu0 %v415_v53 }
 0x2bc   : > { %v417_v54 = vpop.xlane.xlu0 %416 }
 0x2bd   : > { %v418_v55 = vmul.f32 0.03125, %v417_v54 }
 0x2bf   : > { %v419_v56 = vadd.f32 1e-05, %v418_v55 }
 0x2c1   : > { %556 = vrsqrt.f32 %v419_v56 }
 0x2ce   : > { %v557_v57 = vpop.eup %556 }
 0x2cf   : > { %v421_v59 = vmul.f32 %v557_v57, %v413_v51 }
 0x2d1   : > { %v429_v61 = vmul.f32 %v502_v58, %v421_v59 }
 0x2d3   : > { %v437_v62 = vadd.f32 %v503_v60, %v429_v61 }
 0x2d5   : > { %438 = vst.msk [vmem:[%s273_s16] sm:$0xff] %vm290_vm1, %v437_v62 }
 0x2d6 PF: > { %s17_s24 = sadd.s32 1, %s564_s24  }
 0x2d7   : > { %p14_p4 = scmp.ge.s32.totalorder %s17_s24, 4  }
 0x2d9   :  { %16 = sbr.rel (!%p14_p4) target bundleno = 1 (0x1), region = 78 }

// kernel: detrx_decoder_forward.7
= control target key start
LH: loop header
LB: loop body
LE: loop exit
PB: predicated region body
PF: predicated region fallthrough
CT: control target
= control target key end

     0   :  { %s1675_s17 = smov 0   ;;  %s1874_s0 = inlined_call_operand.vmem [shape: f32[2,8,32], index: 0, kind: input, shape index: {}]   ;;  %s1875_s1 = inlined_call_operand.vmem [shape: f32[2,16,32], index: 1, kind: input, shape index: {}]   ;;  %s1876_s2 = inlined_call_operand.vmem [shape: f32[2,16,32], index: 2, kind: input, shape index: {}]   ;;  %s1877_s3 = inlined_call_operand.vmem [shape: f32[2,8,32], index: 3, kind: input, shape index: {}]   ;;  %s1878_s4 = inlined_call_operand.vmem [shape: f32[32,96], index: 4, kind: input, shape index: {}]   ;;  %s1879_s5 = inlined_call_operand.vmem [shape: f32[1,96], index: 5, kind: input, shape index: {}]   ;;  %s1880_s6 = inlined_call_operand.vmem [shape: f32[32,32], index: 6, kind: input, shape index: {}]   ;;  %s1881_s7 = inlined_call_operand.vmem [shape: f32[1,32], index: 7, kind: input, shape index: {}, may-alias: {7,9}]   ;;  %s1882_s8 = inlined_call_operand.vmem [shape: f32[1,32], index: 8, kind: input, shape index: {}]   ;;  %s1883_s9 = inlined_call_operand.vmem [shape: f32[1,32], index: 9, kind: input, shape index: {}, may-alias: {7,9}]   ;;  %s1884_s10 = inlined_call_operand.vmem [shape: f32[2,1,16], index: 10, kind: input, shape index: {}]   ;;  %s1885_s11 = inlined_call_operand.vmem [shape: f32[2,8,32], index: 11, kind: output, shape index: {}]  }
   0x1 LB: > { %s1404_s18 = sadd.s32 4294967295, %s1603_s17   ;;  %p1408_p0 = scmp.ge.s32.totalorder %s1603_s17, 1  ;;  %s1603_s17 = sphi %s1675_s17, %s21_s17  }
   0x2   : > { %p373_p1 = scmp.lt.s32.totalorder %s1603_s17, 3 }
   0x4   : > { %p374_p2 = pnand %p1408_p0, %p373_p1 }
   0x5   : > { %p428_p3 = scmp.lt.s32.totalorder (!%p374_p2), %s1404_s18, 1  ;;  %s1607_s29 = smov (!%p374_p2), 96  }
   0x6   : > { %377 = sbr.rel (%p374_p2) target bundleno = 2304 (0x900), region = 64  ;;  %s1608_s15 = smov (!%p374_p2), 64  }
   0x7   : > { %s1609_s25 = smov (!%p374_p2), 120   ;;  %s1611_s12 = smov (!%p374_p2), 104  }
   0x8   : > { %s1613_s19 = smov (!%p374_p2), 16  }
   0xb   : > { %v456_v0 = vld [vmem:[%s1878_s4 + $0x10] sm:$0xff]  ;;  %v457_v1 = vld [vmem:[%s1878_s4 + $0x18] sm:$0xff]  ;;  %v454_v2 = vld [vmem:[%s1878_s4] sm:$0xff]  ;;  %v1605_v5 = vmov 0.0   ;;  %vm1606_vm0 = vmmov 0   ;;  %s1887_s18 = smov (!%p428_p3, %s1404_s18), 1 }
   0xc   : > { %v459_v3 = vpack.c.bf16 %v457_v1, %v456_v0  ;;  %v455_v4 = vld [vmem:[%s1878_s4 + $0x8] sm:$0xff]  ;;  %1485 = vmatprep.subr.bf16.mxu1 %v1605_v5  ;;  %1477 = vmatprep.subr.bf16.mxu0 %v1605_v5  ;;  %v1700_v6 = vld [vmem:[%s1879_s5] ss:$0 sm:$0xff]  ;;  %s1711_s30 = sshll.u32 %s1887_s18, 3  ;;  %vm475_vm1 = vcmask 261120   ;;  %s1443_s16 = sshll.u32 %s1887_s18, 4 }
   0xd   : > { %1489 = vmatprep.mubr.msk.bf16.mxu1 %vm1606_vm0, %v1605_v5  ;;  %1481 = vmatprep.mubr.msk.bf16.mxu0 %vm1606_vm0, %v1605_v5  ;;  %v458_v7 = vpack.c.bf16 %v455_v4, %v454_v2  ;;  %s431_s14 = scalar_lea.vmem %s1874_s0, %s1711_s30  ;;  %s436_s21 = scalar_lea.vmem %s1875_s1, %s1443_s16  ;;  %vm628_vm2 = vcmask 64512   ;;  %vm716_vm3 = vcmask 130048   ;;  %vm1214_vm4 = vcmask 195584  }
   0xe   : > { %523 = vrot.lane.b32.xlu0 %v459_v3, %s1607_s29  ;;  %1478 = vmatpush3.bf16.msra.mxu0 %v459_v3  ;;  %v461_v8 = vld [vmem:[%s431_s14] sm:$0xff]  ;;  %v467_v12 = vld [vmem:[%s436_s21 + $0x8] sm:$0xff]  ;;  %s441_s24 = scalar_lea.vmem %s1876_s2, %s1443_s16  ;;  %s448_s28 = scalar_lea.vmem %s1884_s10, %s1887_s18 }
   0xf   : > { %1479 = vmatprep.subr.bf16.mxu0 %v1605_v5  ;;  %527 = vrot.lane.b32.xlu1 %v1700_v6, %s1607_s29  ;;  %v462_v9 = vpack.c.bf16 %v461_v8, %v461_v8  ;;  %v466_v11 = vld [vmem:[%s436_s21] sm:$0xff]  ;;  %v464_v19 = vld [vmem:[%s441_s24 + $0x8] sm:$0xff]  ;;  %s1612_s18 = smov 8   ;;  %s445_s27 = scalar_lea.vmem %s1877_s3, %s1711_s30 }
  0x10   : > { %v468_v14 = vpack.c.bf16 %v467_v12, %v466_v11  ;;  %v463_v18 = vld [vmem:[%s441_s24] sm:$0xff]  ;;  %s1614_s24 = smov 24  }
  0x11   : > { %v465_v23 = vpack.c.bf16 %v464_v19, %v463_v18  ;;  %v1770_v40 = vld [vmem:[%s448_s28] ss:$0 sm:$0xff] }
  0x12   : > { %521 = vrot.lane.b32.xlu0 %v458_v7, %s1607_s29  ;;  %1480 = vmatpush3.bf16.msra.mxu0 %v458_v7  ;;  %s1610_s29 = smov 112  }
  0x13   : > { %576 = vrot.lane.b32.xlu1 %v459_v3, %s1608_s15  ;;  %1493 = vmatprep.subr.bf16.mxu0 %v1605_v5 }
  0x15   : > { %1482 = vmatmul.mubr.msk.bf16.vlgmr.msra.gmra.mxu0 %vm475_vm1, %v462_v9 }
  0x16   : > { %574 = vrot.lane.b32.xlu0 %v458_v7, %s1608_s15  ;;  %1497 = vmatprep.mubr.msk.bf16.mxu0 %vm1606_vm0, %v1605_v5 }
  0x80   : > { %v524_v10 = vpop.permute.xlu0 %523 }
  0x81   : > { %1486 = vmatpush3.bf16.msra.mxu1 %v524_v10  ;;  %v528_v15 = vpop.permute.xlu1 %527 }
  0x82   : > { %1487 = vmatprep.subr.bf16.mxu1 %v1605_v5 }
  0x84   : > { %v522_v13 = vpop.permute.xlu0 %521 }
  0x85   : > { %1488 = vmatpush3.bf16.msra.mxu1 %v522_v13  ;;  %v577_v17 = vpop.permute.xlu1 %576 }
  0x86   : > { %1501 = vmatprep.subr.mxu1 %v1605_v5  ;;  %1494 = vmatpush3.bf16.msra.mxu0 %v577_v17 }
  0x87   : > { %1495 = vmatprep.subr.bf16.mxu0 %v1605_v5 }
  0x88   : > { %1490 = vmatmul.mubr.msk.bf16.vlgmr.msra.gmra.mxu1 %vm475_vm1, %v468_v14  ;;  %v575_v21 = vpop.permute.xlu0 %574 }
  0x89   : > { %1505 = vmatprep.mubr.msk.f32.mxu1 %vm1606_vm0, %v1605_v5 }
  0x8a   : > { %1496 = vmatpush3.bf16.msra.mxu0 %v575_v21 }
  0x8b   : > { %1514 = vmatprep.subr.mxu0 %v1605_v5 }
  0x8d   : > { %1498 = vmatmul.mubr.msk.bf16.vlgmr.msra.gmra.mxu0 %vm475_vm1, %v465_v23 }
  0x8e   : > { %1518 = vmatprep.mubr.msk.f32.mxu0 %vm1606_vm0, %v1605_v5 }
  0xd5   : > { %v513_v16 = vpop.f32.mrf.mxu0 }
  0xd6   : > { %v1745_v31 = vadd.f32 %v1700_v6, %v513_v16 }
  0xd7   : > { %v1483_v20 = vpop.f32.mrf.mxu0 }
  0xd9   : > { %v516_v22 = vpop.f32.mrf.mxu0 }
  0xdb   : > { %v1484_v24 = vpop.f32.mrf.mxu0 }
 0x148   : > { %v567_v25 = vpop.f32.mrf.mxu1 }
 0x149   : > { %v1740_v26 = vadd.f32 %v567_v25, %v528_v15 }
 0x14a   : > { %v1491_v27 = vpop.f32.mrf.mxu1 }
 0x14b   : > { %775 = vrot.lane.b32.xlu0 %v1740_v26, %s1609_s25 }
 0x14c   : > { %v570_v28 = vpop.f32.mrf.mxu1 }
 0x14d   : > { %v571_v29 = vadd.f32 %v570_v28, %v528_v15  ;;  %v620_v33 = vpop.f32.mrf.mxu0 }
 0x14e   : > { %v1492_v30 = vpop.f32.mrf.mxu1 }
 0x14f   : > { %777 = vrot.lane.b32.xlu1 %v571_v29, %s1609_s25  ;;  %1502 = vmatpush3.xpose.msk.msra.mxu1 %vm628_vm2, %v571_v29  ;;  %v1499_v34 = vpop.f32.mrf.mxu0 }
 0x150   : > { %1503 = vmatprep.subr.mxu1 %v1605_v5 }
 0x151   : > { %v623_v37 = vpop.f32.mrf.mxu0 }
 0x153   : > { %1504 = vmatpush3.xpose.msk.msra.mxu1 %vm628_vm2, %v1740_v26  ;;  %773 = vrot.lane.b32.xlu1 %v1745_v31, %s1609_s25  ;;  %v1500_v38 = vpop.f32.mrf.mxu0 }
 0x154   : > { %1508 = vmatprep.subr.bf16.mxu1 %v1605_v5 }
 0x156   : > { %1506 = vmatmul.mubr.msk.f32.vlgmr.msra.gmra.mxu1 %vm628_vm2, %v1745_v31 }
 0x157   : > { %1510 = vmatprep.mubr.msk.bf16.mxu1 %vm1606_vm0, %v1605_v5 }
 0x1bd   : > { %v776_v35 = vpop.permute.xlu0 %775 }
 0x1c1   : > { %v778_v32 = vpop.permute.xlu1 %777 }
 0x1c2   : > { %1515 = vmatpush3.xpose.msk.msra.mxu0 %vm628_vm2, %v778_v32 }
 0x1c3   : > { %1516 = vmatprep.subr.mxu0 %v1605_v5 }
 0x1c5   : > { %v774_v36 = vpop.permute.xlu1 %773 }
 0x1c6   : > { %1517 = vmatpush3.xpose.msk.msra.mxu0 %vm628_vm2, %v776_v35 }
 0x1c7   : > { %1521 = vmatprep.subr.bf16.mxu0 %v1605_v5 }
 0x1c9   : > { %1519 = vmatmul.mubr.msk.f32.vlgmr.msra.gmra.mxu0 %vm628_vm2, %v774_v36 }
 0x1ca   : > { %1523 = vmatprep.mubr.msk.bf16.mxu0 %vm1606_vm0, %v1605_v5 }
 0x216   : > { %v704_v39 = vpop.f32.mrf.mxu1 }
 0x217   : > { %v708_v41 = vmul.f32 0.35355338, %v704_v39 }
 0x218   : > { %v1507_v42 = vpop.f32.mrf.mxu1 }
 0x219   : > { %v715_v43 = vadd.f32 %v1770_v40, %v708_v41 }
 0x21b   : > { %v717_v44 = vsel %vm716_vm3, %v715_v43, -inf }
 0x21c   : > { %718 = vmax.xlane.f32.xlu0 %v717_v44 }
 0x232   : > { %580 = vrot.lane.b32.xlu0 %v1700_v6, %s1608_s15 }
 0x236   : > { %920 = vrot.lane.b32.xlu0 %v571_v29, %s1610_s29 }
 0x23a   : > { %1062 = vrot.lane.b32.xlu0 %v571_v29, %s1611_s12 }
 0x23e   : > { %918 = vrot.lane.b32.xlu0 %v1740_v26, %s1610_s29 }
 0x242   : > { %916 = vrot.lane.b32.xlu0 %v1745_v31, %s1610_s29 }
 0x289   : > { %v851_v45 = vpop.f32.mrf.mxu0 }
 0x28a   : > { %v855_v46 = vmul.f32 0.35355338, %v851_v45 }
 0x28b   : > { %v1520_v47 = vpop.f32.mrf.mxu0 }
 0x28c   : > { %v856_v48 = vadd.f32 %v1770_v40, %v855_v46 }
 0x28e   : > { %v857_v49 = vsel %vm716_vm3, %v856_v48, -inf }
 0x28f   : > { %858 = vmax.xlane.f32.xlu1 %v857_v49 }
 0x2a5   : > { %v719_v50 = vpop.xlane.xlu0 %718 }
 0x2a6   : > { %v720_v55 = vsub.f32 %v715_v43, %v719_v50 }
 0x2a8   : > { %v721_v56 = vmul.f32 1.442695, %v720_v55  ;;  %v1220_v55 = vld [vmem:[%s1880_s6 + $0x18] sm:$0xff] }
 0x2a9   : > { %v581_v51 = vpop.permute.xlu0 %580 }
 0x2aa   : > { %v621_v52 = vadd.f32 %v620_v33, %v581_v51  ;;  %v624_v53 = vadd.f32 %v623_v37, %v581_v51  ;;  %1579 = vpow2.f32 %v721_v56 }
 0x2ac   : > { %v1784_v54 = vpack.c.bf16 %v624_v53, %v621_v52 }
 0x2ad   : > { %v921_v2 = vpop.permute.xlu0 %920 }
 0x2ae   : > { %1509 = vmatpush3.bf16.msra.mxu1 %v1784_v54  ;;  %870 = vrot.lane.b32.xlu1 %v1784_v54, %s1609_s25 }
 0x2af   : > { %1527 = vmatprep.subr.mxu1 %v1605_v5 }
 0x2b1   : > { %v1063_v4 = vpop.permute.xlu0 %1062 }
 0x2b5   : > { %v919_v8 = vpop.permute.xlu0 %918 }
 0x2b7   : > { %v1580_v57 = vpop.eup %1579 }
 0x2b8   : > { %v723_v58 = vsel %vm716_vm3, %v1580_v57, 0.0 }
 0x2b9   : > { %v917_v9 = vpop.permute.xlu0 %916 }
 0x2d2   : > { %724 = vadd.xlane.f32.xlu1 %v723_v58 }
 0x318   : > { %v859_v59 = vpop.xlane.xlu1 %858 }
 0x319   : > { %v860_v60 = vsub.f32 %v856_v48, %v859_v59 }
 0x31b   : > { %v861_v61 = vmul.f32 1.442695, %v860_v60 }
 0x31d   : > { %1581 = vpow2.f32 %v861_v61  ;;  %v1217_v61 = vld [vmem:[%s1880_s6] sm:$0xff] }
 0x320   : > { %v871_v62 = vpop.permute.xlu1 %870 }
 0x321   : > { %1522 = vmatpush3.bf16.msra.mxu0 %v871_v62  ;;  %v1218_v62 = vld [vmem:[%s1880_s6 + $0x8] sm:$0xff] }
 0x322   : > { %1540 = vmatprep.subr.mxu0 %v1605_v5 }
 0x32a   : > { %v1582_v63 = vpop.eup %1581 }
 0x32b   : > { %v863_v0 = vsel %vm716_vm3, %v1582_v63, 0.0 }
 0x32c   : > { %864 = vadd.xlane.f32.xlu1 %v863_v0 }
 0x33d   : > { %1060 = vrot.lane.b32.xlu1 %v1740_v26, %s1611_s12 }
 0x341   : > { %1058 = vrot.lane.b32.xlu1 %v1745_v31, %s1611_s12 }
 0x35b   : > { %v725_v1 = vpop.xlane.xlu1 %724 }
 0x35c   : > { %1583 = vrcp.f32 %v725_v1 }
 0x369   : > { %v1584_v3 = vpop.eup %1583 }
 0x36a   : > { %v727_v6 = vmul.f32 %v1584_v3, %v1580_v57 }
 0x36c   : > { %v728_v7 = vpack.c.bf16 %v727_v6, %v727_v6 }
 0x36e   : > { %1511 = vmatmul.mubr.msk.bf16.vlgmr.msra.gmra.mxu1 %vm716_vm3, %v728_v7 }
 0x36f   : > { %1528 = vmatpush3.xpose.msk.msra.mxu1 %vm628_vm2, %v921_v2  ;;  %1531 = vmatprep.mubr.msk.f32.mxu1 %vm1606_vm0, %v1605_v5 }
 0x370   : > { %1529 = vmatprep.subr.mxu1 %v1605_v5 }
 0x373   : > { %1530 = vmatpush3.xpose.msk.msra.mxu1 %vm628_vm2, %v919_v8 }
 0x374   : > { %1534 = vmatprep.subr.bf16.mxu1 %v1605_v5 }
 0x376   : > { %1532 = vmatmul.mubr.msk.f32.vlgmr.msra.gmra.mxu1 %vm628_vm2, %v917_v9 }
 0x377   : > { %1536 = vmatprep.mubr.msk.bf16.mxu1 %vm1606_vm0, %v1605_v5 }
 0x3b5   : > { %v865_v10 = vpop.xlane.xlu1 %864 }
 0x3b6   : > { %1585 = vrcp.f32 %v865_v10 }
 0x3b9   : > { %v1061_v14 = vpop.permute.xlu1 %1060 }
 0x3bd   : > { %v1059_v15 = vpop.permute.xlu1 %1058 }
 0x3c3   : > { %v1586_v11 = vpop.eup %1585 }
 0x3c4   : > { %v867_v12 = vmul.f32 %v1586_v11, %v1582_v63  ;;  %v1221_v63 = vpack.c.bf16 %v1218_v62, %v1217_v61  ;;  %v1437_v11 = vld [vmem:[%s1881_s7] ss:$0 sm:$0xff] }
 0x3c6   : > { %v868_v13 = vpack.c.bf16 %v867_v12, %v867_v12 }
 0x3c8   : > { %1524 = vmatmul.mubr.msk.bf16.vlgmr.msra.gmra.mxu0 %vm716_vm3, %v868_v13  ;;  %v1273_v13 = vld [vmem:[%s445_s27] sm:$0xff] }
 0x3c9   : > { %1541 = vmatpush3.xpose.msk.msra.mxu0 %vm628_vm2, %v1063_v4  ;;  %1544 = vmatprep.mubr.msk.f32.mxu0 %vm1606_vm0, %v1605_v5 }
 0x3ca   : > { %1542 = vmatprep.subr.mxu0 %v1605_v5 }
 0x3cd   : > { %1543 = vmatpush3.xpose.msk.msra.mxu0 %vm628_vm2, %v1061_v14 }
 0x3ce   : > { %1547 = vmatprep.subr.bf16.mxu0 %v1605_v5 }
 0x3d0   : > { %1545 = vmatmul.mubr.msk.f32.vlgmr.msra.gmra.mxu0 %vm628_vm2, %v1059_v15 }
 0x3d1   : > { %1549 = vmatprep.mubr.msk.bf16.mxu0 %vm1606_vm0, %v1605_v5 }
 0x42e   : > { %v1817_v16 = vpop.f32.mrf.mxu1 }
 0x430   : > { %v1512_v17 = vpop.f32.mrf.mxu1 }
 0x432   : > { %v770_v18 = vpop.f32.mrf.mxu1 }
 0x434   : > { %v1513_v19 = vpop.f32.mrf.mxu1 }
 0x436   : > { %v994_v20 = vpop.f32.mrf.mxu1 }
 0x437   : > { %v998_v21 = vmul.f32 0.35355338, %v994_v20 }
 0x438   : > { %v1533_v22 = vpop.f32.mrf.mxu1 }
 0x439   : > { %v999_v23 = vadd.f32 %v1770_v40, %v998_v21 }
 0x43b   : > { %v1000_v24 = vsel %vm716_vm3, %v999_v23, -inf }
 0x43c   : > { %1001 = vmax.xlane.f32.xlu0 %v1000_v24 }
 0x488   : > { %v910_v25 = vpop.f32.mrf.mxu0 }
 0x48a   : > { %v1525_v26 = vpop.f32.mrf.mxu0 }
 0x48c   : > { %v913_v27 = vpop.f32.mrf.mxu0 }
 0x48e   : > { %v1526_v28 = vpop.f32.mrf.mxu0 }
 0x490   : > { %v1136_v29 = vpop.f32.mrf.mxu0 }
 0x491   : > { %v1140_v30 = vmul.f32 0.35355338, %v1136_v29  ;;  %v1439_v29 = vld [vmem:[%s1882_s8] ss:$0 sm:$0xff] }
 0x492   : > { %v1546_v31 = vpop.f32.mrf.mxu0 }
 0x493   : > { %v1141_v32 = vadd.f32 %v1770_v40, %v1140_v30  ;;  %v1440_v31 = vld [vmem:[%s1883_s9] ss:$0 sm:$0xff] }
 0x495   : > { %v1142_v33 = vsel %vm716_vm3, %v1141_v32, -inf }
 0x496   : > { %1143 = vmax.xlane.f32.xlu1 %v1142_v33 }
 0x4a7   : > { %1012 = vrot.lane.b32.xlu1 %v1784_v54, %s1610_s29 }
 0x4ab   : > { %1201 = vrot.lane.b32.xlu1 %v910_v25, %s1612_s18 }
 0x4c5   : > { %v1002_v34 = vpop.xlane.xlu0 %1001 }
 0x4c6   : > { %v1003_v35 = vsub.f32 %v999_v23, %v1002_v34 }
 0x4c8   : > { %v1004_v36 = vmul.f32 1.442695, %v1003_v35 }
 0x4ca   : > { %1587 = vpow2.f32 %v1004_v36 }
 0x4d7   : > { %v1588_v37 = vpop.eup %1587 }
 0x4d8   : > { %v1006_v38 = vsel %vm716_vm3, %v1588_v37, 0.0 }
 0x4d9   : > { %1007 = vadd.xlane.f32.xlu0 %v1006_v38 }
 0x51f   : > { %v1144_v39 = vpop.xlane.xlu1 %1143 }
 0x520   : > { %v1145_v41 = vsub.f32 %v1141_v32, %v1144_v39 }
 0x522   : > { %v1146_v42 = vmul.f32 1.442695, %v1145_v41 }
 0x523   : > { %v1013_v40 = vpop.permute.xlu1 %1012 }
 0x524   : > { %1589 = vpow2.f32 %v1146_v42  ;;  %1535 = vmatpush3.bf16.msra.mxu1 %v1013_v40 }
 0x525   : > { %1553 = vmatprep.subr.bf16.mxu1 %v1605_v5 }
 0x527   : > { %v1202_v3 = vpop.permute.xlu1 %1201 }
 0x528   : > { %v1212_v6 = vsel %vm628_vm2, %v1817_v16, %v1202_v3 }
 0x531   : > { %v1590_v43 = vpop.eup %1589 }
 0x532   : > { %v1148_v44 = vsel %vm716_vm3, %v1590_v43, 0.0 }
 0x533   : > { %1149 = vadd.xlane.f32.xlu0 %v1148_v44 }
 0x549   : > { %1154 = vrot.lane.b32.xlu0 %v1784_v54, %s1611_s12  ;;  %v1219_v54 = vld [vmem:[%s1880_s6 + $0x10] sm:$0xff] }
 0x54a   : > { %v1222_v56 = vpack.c.bf16 %v1220_v55, %v1219_v54 }
 0x562   : > { %v1008_v45 = vpop.xlane.xlu0 %1007 }
 0x563   : > { %1591 = vrcp.f32 %v1008_v45 }
 0x570   : > { %v1592_v46 = vpop.eup %1591 }
 0x571   : > { %v1010_v47 = vmul.f32 %v1592_v46, %v1588_v37 }
 0x573   : > { %v1011_v48 = vpack.c.bf16 %v1010_v47, %v1010_v47 }
 0x575   : > { %1537 = vmatmul.mubr.msk.bf16.vlgmr.msra.gmra.mxu1 %vm716_vm3, %v1011_v48 }
 0x576   : > { %1557 = vmatprep.mubr.msk.bf16.mxu1 %vm1606_vm0, %v1605_v5  ;;  %1554 = vmatpush3.bf16.msra.mxu1 %v1222_v56 }
 0x577   : > { %1555 = vmatprep.subr.bf16.mxu1 %v1605_v5 }
 0x57a   : > { %1556 = vmatpush3.bf16.msra.mxu1 %v1221_v63 }
 0x5bc   : > { %v1150_v49 = vpop.xlane.xlu0 %1149 }
 0x5bd   : > { %1593 = vrcp.f32 %v1150_v49 }
 0x5c0   : > { %v1155_v50 = vpop.permute.xlu0 %1154 }
 0x5c1   : > { %1548 = vmatpush3.bf16.msra.mxu0 %v1155_v50 }
 0x5ca   : > { %v1594_v51 = vpop.eup %1593 }
 0x5cb   : > { %v1152_v52 = vmul.f32 %v1594_v51, %v1590_v43 }
 0x5cd   : > { %v1153_v53 = vpack.c.bf16 %v1152_v52, %v1152_v52 }
 0x5cf   : > { %1550 = vmatmul.mubr.msk.bf16.vlgmr.msra.gmra.mxu0 %vm716_vm3, %v1153_v53 }
 0x635   : > { %v1052_v57 = vpop.f32.mrf.mxu1 }
 0x636   : > { %1205 = vrot.lane.b32.xlu1 %v1052_v57, %s1613_s19  ;;  %s452_s19 = scalar_lea.vmem %s1885_s11, %s1711_s30 }
 0x637   : > { %v1538_v58 = vpop.f32.mrf.mxu1 }
 0x639   : > { %v1055_v59 = vpop.f32.mrf.mxu1 }
 0x63b   : > { %v1539_v60 = vpop.f32.mrf.mxu1 }
 0x68f   : > { %v1194_v0 = vpop.f32.mrf.mxu0 }
 0x690   : > { %1209 = vrot.lane.b32.xlu0 %v1194_v0, %s1614_s24 }
 0x691   : > { %v1551_v5 = vpop.f32.mrf.mxu0 }
 0x693   : > { %v1197_v1 = vpop.f32.mrf.mxu0 }
 0x695   : > { %v1552_v2 = vpop.f32.mrf.mxu0 }
 0x6a8   : > { %v1206_v4 = vpop.permute.xlu1 %1205 }
 0x6a9   : > { %v1213_v7 = vsel %vm716_vm3, %v1212_v6, %v1206_v4 }
 0x702   : > { %v1210_v8 = vpop.permute.xlu0 %1209 }
 0x703   : > { %v1215_v9 = vsel %vm1214_vm4, %v1213_v7, %v1210_v8 }
 0x704   : > { %v1216_v10 = vpack.c.bf16 %v1215_v9, %v1215_v9 }
 0x706   : > { %1558 = vmatmul.mubr.msk.bf16.vlgmr.msra.gmra.mxu1 %vm475_vm1, %v1216_v10 }
 0x7c6   : > { %v1267_v12 = vpop.f32.mrf.mxu1 }
 0x7c7   : > { %v1268_v14 = vadd.f32 %v1437_v11, %v1267_v12 }
 0x7c8   : > { %v1559_v15 = vpop.f32.mrf.mxu1 }
 0x7c9   : > { %v1274_v16 = vadd.f32 %v1273_v13, %v1268_v14 }
 0x7ca   : > { %v1270_v17 = vpop.f32.mrf.mxu1 }
 0x7cb   : > { %v1275_v18 = vsel %vm475_vm1, %v1274_v16, 0.0 }
 0x7cc   : > { %1276 = vadd.xlane.f32.xlu1 %v1275_v18  ;;  %v1560_v19 = vpop.f32.mrf.mxu1 }
 0x855   : > { %v1277_v20 = vpop.xlane.xlu1 %1276 }
 0x856   : > { %v1279_v21 = vmul.f32 0.03125, %v1277_v20 }
 0x858   : > { %v1280_v22 = vsub.f32 %v1274_v16, %v1279_v21 }
 0x85a   : > { %v1281_v23 = vmul.f32 %v1280_v22, %v1280_v22 }
 0x85c   : > { %v1282_v24 = vsel %vm475_vm1, %v1281_v23, 0.0 }
 0x85d   : > { %1283 = vadd.xlane.f32.xlu0 %v1282_v24 }
 0x8e6   : > { %v1284_v25 = vpop.xlane.xlu0 %1283 }
 0x8e7   : > { %v1285_v26 = vmul.f32 0.03125, %v1284_v25 }
 0x8e9   : > { %v1286_v27 = vadd.f32 1e-05, %v1285_v26 }
 0x8eb   : > { %1595 = vrsqrt.f32 %v1286_v27 }
 0x8f8   : > { %v1596_v28 = vpop.eup %1595 }
 0x8f9   : > { %v1288_v30 = vmul.f32 %v1596_v28, %v1280_v22 }
 0x8fb   : > { %v1296_v32 = vmul.f32 %v1439_v29, %v1288_v30 }
 0x8fd   : > { %v1304_v33 = vadd.f32 %v1440_v31, %v1296_v32 }
 0x8ff   : > { %1305 = vst.msk [vmem:[%s452_s19] sm:$0xff] %vm475_vm1, %v1304_v33 }
 0x900 PF: > { %s21_s17 = sadd.s32 1, %s1603_s17  }
 0x901   : > { %p18_p4 = scmp.ge.s32.totalorder %s21_s17, 4  }
 0x903   :  { %20 = sbr.rel (!%p18_p4) target bundleno = 1 (0x1), region = 106 }

// kernel: detrx_decoder_forward.6
= control target key start
LH: loop header
LB: loop body
LE: loop exit
PB: predicated region body
PF: predicated region fallthrough
CT: control target
= control target key end

     0   :  { %s1389_s27 = smov 0   ;;  %s1550_s0 = inlined_call_operand.vmem [shape: f32[2,8,32], index: 0, kind: input, shape index: {}]   ;;  %s1551_s1 = inlined_call_operand.vmem [shape: f32[2,8,32], index: 1, kind: input, shape index: {}]   ;;  %s1552_s2 = inlined_call_operand.vmem [shape: f32[32,96], index: 2, kind: input, shape index: {}]   ;;  %s1553_s3 = inlined_call_operand.vmem [shape: f32[1,96], index: 3, kind: input, shape index: {}]   ;;  %s1554_s4 = inlined_call_operand.vmem [shape: f32[32,32], index: 4, kind: input, shape index: {}]   ;;  %s1555_s5 = inlined_call_operand.vmem [shape: f32[1,32], index: 5, kind: input, shape index: {}, may-alias: {5,7}]   ;;  %s1556_s6 = inlined_call_operand.vmem [shape: f32[1,32], index: 6, kind: input, shape index: {}]   ;;  %s1557_s7 = inlined_call_operand.vmem [shape: f32[1,32], index: 7, kind: input, shape index: {}, may-alias: {5,7}]   ;;  %s1558_s8 = inlined_call_operand.vmem [shape: f32[2,8,32], index: 8, kind: output, shape index: {}]  }
   0x1 LB: > { %s1162_s28 = sadd.s32 4294967295, %s1329_s27   ;;  %p1166_p0 = scmp.ge.s32.totalorder %s1329_s27, 1  ;;  %s1329_s27 = sphi %s1389_s27, %s18_s27  }
   0x2   : > { %p270_p1 = scmp.lt.s32.totalorder %s1329_s27, 3 }
   0x4   : > { %p271_p2 = pnand %p1166_p0, %p270_p1 }
   0x5   : > { %p306_p3 = scmp.lt.s32.totalorder (!%p271_p2), %s1162_s28, 1  ;;  %s1333_s21 = smov (!%p271_p2), 120  }
   0x6   : > { %274 = sbr.rel (%p271_p2) target bundleno = 2181 (0x885), region = 52  ;;  %s1334_s22 = smov (!%p271_p2), 96  }
   0x7   : > { %s1335_s23 = smov (!%p271_p2), 88   ;;  %s1336_s24 = smov (!%p271_p2), 64  }
   0x8   : > { %s1337_s29 = smov (!%p271_p2), 80   ;;  %s1338_s30 = smov (!%p271_p2), 72  }
   0x9   : > { %s1339_s9 = smov (!%p271_p2), 104   ;;  %s1340_s10 = smov (!%p271_p2), 112  }
   0xa   : > { %s1341_s11 = smov (!%p271_p2), 8  }
   0xb   : > { %v321_v0 = vld [vmem:[%s1552_s2 + $0x10] sm:$0xff]  ;;  %v322_v1 = vld [vmem:[%s1552_s2 + $0x18] sm:$0xff]  ;;  %v319_v2 = vld [vmem:[%s1552_s2] sm:$0xff]  ;;  %v1331_v3 = vmov 0.0   ;;  %vm1332_vm0 = vmmov 0   ;;  %s1560_s28 = smov (!%p306_p3, %s1162_s28), 1 }
   0xc   : > { %1216 = vmatprep.subr.bf16.mxu0 %v1331_v3  ;;  %v324_v4 = vpack.c.bf16 %v322_v1, %v321_v0  ;;  %v320_v5 = vld [vmem:[%s1552_s2 + $0x8] sm:$0xff]  ;;  %1220 = vmatprep.mubr.msk.bf16.mxu0 %vm1332_vm0, %v1331_v3  ;;  %s1416_s15 = sshll.u32 %s1560_s28, 3  ;;  %vm336_vm1 = vcmask 261120   ;;  %v1170_v9 = vld [vmem:[%s1553_s3] ss:$0 sm:$0xff]  ;;  %vm437_vm2 = vcmask 64512  }
   0xd   : > { %1224 = vmatprep.subr.bf16.mxu1 %v1331_v3  ;;  %1228 = vmatprep.mubr.msk.bf16.mxu1 %vm1332_vm0, %v1331_v3  ;;  %v323_v6 = vpack.c.bf16 %v320_v5, %v319_v2  ;;  %s309_s18 = scalar_lea.vmem %s1550_s0, %s1416_s15  ;;  %s313_s28 = scalar_lea.vmem %s1551_s1, %s1416_s15  ;;  %vm529_vm3 = vcmask 1043456   ;;  %vm1004_vm4 = vcmask 130048   ;;  %vm1006_vm5 = vcmask 195584  }
   0xe   : > { %1217 = vmatpush3.bf16.msra.mxu0 %v324_v4  ;;  %v326_v7 = vld [vmem:[%s309_s18] sm:$0xff] }
   0xf   : > { %1218 = vmatprep.subr.bf16.mxu0 %v1331_v3  ;;  %v327_v8 = vpack.c.bf16 %v326_v7, %v326_v7  ;;  %v1448_v19 = vld [vmem:[%s313_s28] sm:$0xff] }
  0x10   : > { %v329_v21 = vpack.c.bf16 %v1448_v19, %v1448_v19 }
  0x12   : > { %1219 = vmatpush3.bf16.msra.mxu0 %v323_v6 }
  0x13   : > { %1232 = vmatprep.subr.mxu0 %v1331_v3 }
  0x15   : > { %1221 = vmatmul.mubr.msk.bf16.vlgmr.msra.gmra.mxu0 %vm336_vm1, %v327_v8 }
  0x16   : > { %1234 = vmatprep.mubr.msk.f32.mxu0 %vm1332_vm0, %v1331_v3 }
  0xd5   : > { %v374_v10 = vpop.f32.mrf.mxu0 }
  0xd6   : > { %v1429_v11 = vadd.f32 %v1170_v9, %v374_v10 }
  0xd7   : > { %v1222_v12 = vpop.f32.mrf.mxu0 }
  0xd8   : > { %573 = vrot.lane.b32.xlu1 %v1429_v11, %s1333_s21  ;;  %435 = vrot.lane.b32.xlu0 %v1429_v11, %s1334_s22  ;;  %s1343_s22 = smov 24  }
  0xd9   : > { %v377_v13 = vpop.f32.mrf.mxu0 }
  0xdb   : > { %v1223_v14 = vpop.f32.mrf.mxu0 }
  0xdc   : > { %575 = vrot.lane.b32.xlu0 %v1429_v11, %s1335_s23  ;;  %384 = vrot.lane.b32.xlu1 %v324_v4, %s1336_s24 }
  0xe0   : > { %382 = vrot.lane.b32.xlu0 %v323_v6, %s1336_s24 }
 0x14a   : > { %v574_v15 = vpop.permute.xlu1 %573  ;;  %v436_v16 = vpop.permute.xlu0 %435 }
 0x14b   : > { %1233 = vmatpush3.xpose.msk.msra.mxu0 %vm437_vm2, %v436_v16 }
 0x14c   : > { %1243 = vmatprep.subr.mxu0 %v1331_v3 }
 0x14e   : > { %1235 = vmatmul.mubr.msk.f32.vlgmr.msra.gmra.mxu0 %vm437_vm2, %v1429_v11  ;;  %v576_v17 = vpop.permute.xlu0 %575  ;;  %v385_v18 = vpop.permute.xlu1 %384 }
 0x14f   : > { %1244 = vmatpush3.xpose.msk.msra.mxu0 %vm437_vm2, %v576_v17  ;;  %1245 = vmatprep.mubr.msk.f32.mxu0 %vm1332_vm0, %v1331_v3 }
 0x150   : > { %1225 = vmatpush3.bf16.msra.mxu1 %v385_v18  ;;  %1248 = vmatprep.subr.bf16.mxu0 %v1331_v3 }
 0x151   : > { %1226 = vmatprep.subr.bf16.mxu1 %v1331_v3 }
 0x152   : > { %1246 = vmatmul.mubr.msk.f32.vlgmr.msra.gmra.mxu0 %vm437_vm2, %v574_v15  ;;  %v383_v20 = vpop.permute.xlu0 %382 }
 0x153   : > { %1250 = vmatprep.mubr.msk.bf16.mxu0 %vm1332_vm0, %v1331_v3 }
 0x154   : > { %1227 = vmatpush3.bf16.msra.mxu1 %v383_v20 }
 0x155   : > { %1237 = vmatprep.subr.bf16.mxu1 %v1331_v3 }
 0x157   : > { %1229 = vmatmul.mubr.msk.bf16.vlgmr.msra.gmra.mxu1 %vm336_vm1, %v329_v21 }
 0x158   : > { %1239 = vmatprep.mubr.msk.bf16.mxu1 %vm1332_vm0, %v1331_v3 }
 0x20e   : > { %v508_v22 = vpop.f32.mrf.mxu0 }
 0x20f   : > { %v512_v23 = vmul.f32 0.35355338, %v508_v22 }
 0x210   : > { %v1236_v24 = vpop.f32.mrf.mxu0 }
 0x211   : > { %v513_v25 = vsel %vm437_vm2, %v512_v23, -inf }
 0x212   : > { %514 = vmax.xlane.f32.xlu1 %v513_v25  ;;  %v647_v26 = vpop.f32.mrf.mxu0 }
 0x213   : > { %v651_v27 = vmul.f32 0.35355338, %v647_v26 }
 0x214   : > { %v1247_v28 = vpop.f32.mrf.mxu0 }
 0x215   : > { %v652_v29 = vsel %vm437_vm2, %v651_v27, -inf }
 0x216   : > { %653 = vmax.xlane.f32.xlu0 %v652_v29 }
 0x217   : > { %v428_v30 = vpop.f32.mrf.mxu1 }
 0x219   : > { %v1230_v31 = vpop.f32.mrf.mxu1 }
 0x21b   : > { %v431_v32 = vpop.f32.mrf.mxu1 }
 0x21d   : > { %v1231_v33 = vpop.f32.mrf.mxu1 }
 0x22c   : > { %388 = vrot.lane.b32.xlu0 %v1170_v9, %s1336_s24 }
 0x230   : > { %715 = vrot.lane.b32.xlu0 %v1429_v11, %s1337_s29 }
 0x234   : > { %854 = vrot.lane.b32.xlu0 %v1429_v11, %s1338_s30 }
 0x238   : > { %852 = vrot.lane.b32.xlu0 %v1429_v11, %s1339_s9 }
 0x29b   : > { %v515_v34 = vpop.xlane.xlu1 %514 }
 0x29c   : > { %v516_v35 = vsub.f32 %v512_v23, %v515_v34 }
 0x29e   : > { %v517_v36 = vmul.f32 1.442695, %v516_v35 }
 0x29f   : > { %v654_v37 = vpop.xlane.xlu0 %653 }
 0x2a0   : > { %1305 = vpow2.f32 %v517_v36  ;;  %v655_v38 = vsub.f32 %v651_v27, %v654_v37 }
 0x2a2   : > { %v656_v39 = vmul.f32 1.442695, %v655_v38  ;;  %v1011_v38 = vld [vmem:[%s1554_s4 + $0x10] sm:$0xff] }
 0x2a3   : > { %v389_v40 = vpop.permute.xlu0 %388 }
 0x2a4   : > { %1307 = vpow2.f32 %v656_v39  ;;  %v429_v41 = vadd.f32 %v428_v30, %v389_v40  ;;  %v1012_v39 = vld [vmem:[%s1554_s4 + $0x18] sm:$0xff] }
 0x2a5   : > { %v1014_v40 = vpack.c.bf16 %v1012_v39, %v1011_v38 }
 0x2a6   : > { %v1468_v42 = vpack.c.bf16 %v429_v41, %v429_v41  ;;  %v1009_v41 = vld [vmem:[%s1554_s4] sm:$0xff] }
 0x2a7   : > { %v716_v54 = vpop.permute.xlu0 %715 }
 0x2a8   : > { %v531_v43 = vsel %vm529_vm3, %v1468_v42, 0 }
 0x2a9   : > { %1238 = vmatpush3.bf16.msra.mxu1 %v531_v43 }
 0x2aa   : > { %1254 = vmatprep.subr.mxu1 %v1331_v3 }
 0x2ab   : > { %v855_v59 = vpop.permute.xlu0 %854 }
 0x2ad   : > { %v1306_v44 = vpop.eup %1305 }
 0x2ae   : > { %v519_v45 = vsel %vm437_vm2, %v1306_v44, 0.0 }
 0x2af   : > { %520 = vadd.xlane.f32.xlu1 %v519_v45  ;;  %v853_v61 = vpop.permute.xlu0 %852 }
 0x2b1   : > { %v1308_v46 = vpop.eup %1307 }
 0x2b2   : > { %v658_v47 = vsel %vm437_vm2, %v1308_v46, 0.0 }
 0x2b3   : > { %659 = vadd.xlane.f32.xlu1 %v658_v47 }
 0x2c4   : > { %665 = vrot.lane.b32.xlu1 %v1468_v42, %s1333_s21  ;;  %s1342_s21 = smov 16  }
 0x2c8   : > { %713 = vrot.lane.b32.xlu1 %v1429_v11, %s1340_s10 }
 0x338   : > { %v521_v48 = vpop.xlane.xlu1 %520 }
 0x339   : > { %1309 = vrcp.f32 %v521_v48 }
 0x33c   : > { %v660_v49 = vpop.xlane.xlu1 %659 }
 0x33d   : > { %1311 = vrcp.f32 %v660_v49 }
 0x340   : > { %v666_v50 = vpop.permute.xlu1 %665 }
 0x341   : > { %v671_v51 = vsel %vm529_vm3, %v666_v50, 0 }
 0x342   : > { %1249 = vmatpush3.bf16.msra.mxu0 %v671_v51 }
 0x343   : > { %1265 = vmatprep.subr.mxu0 %v1331_v3 }
 0x344   : > { %v714_v60 = vpop.permute.xlu1 %713 }
 0x346   : > { %v1310_v52 = vpop.eup %1309 }
 0x347   : > { %v523_v53 = vmul.f32 %v1310_v52, %v1306_v44 }
 0x349   : > { %v524_v55 = vpack.c.bf16 %v523_v53, %v523_v53 }
 0x34a   : > { %v1312_v56 = vpop.eup %1311 }
 0x34b   : > { %1240 = vmatmul.mubr.msk.bf16.vlgmr.msra.gmra.mxu1 %vm437_vm2, %v524_v55  ;;  %v662_v57 = vmul.f32 %v1312_v56, %v1308_v46 }
 0x34c   : > { %1255 = vmatpush3.xpose.msk.msra.mxu1 %vm437_vm2, %v716_v54  ;;  %1256 = vmatprep.mubr.msk.f32.mxu1 %vm1332_vm0, %v1331_v3 }
 0x34d   : > { %v663_v58 = vpack.c.bf16 %v662_v57, %v662_v57  ;;  %1259 = vmatprep.subr.bf16.mxu1 %v1331_v3 }
 0x34f   : > { %1251 = vmatmul.mubr.msk.bf16.vlgmr.msra.gmra.mxu0 %vm437_vm2, %v663_v58  ;;  %v1185_v58 = vld [vmem:[%s1555_s5] ss:$0 sm:$0xff] }
 0x350   : > { %1266 = vmatpush3.xpose.msk.msra.mxu0 %vm437_vm2, %v855_v59  ;;  %1267 = vmatprep.mubr.msk.f32.mxu0 %vm1332_vm0, %v1331_v3 }
 0x351   : > { %1270 = vmatprep.subr.bf16.mxu0 %v1331_v3 }
 0x353   : > { %1257 = vmatmul.mubr.msk.f32.vlgmr.msra.gmra.mxu1 %vm437_vm2, %v714_v60 }
 0x354   : > { %1261 = vmatprep.mubr.msk.bf16.mxu1 %vm1332_vm0, %v1331_v3 }
 0x357   : > { %1268 = vmatmul.mubr.msk.f32.vlgmr.msra.gmra.mxu0 %vm437_vm2, %v853_v61 }
 0x358   : > { %1272 = vmatprep.mubr.msk.bf16.mxu0 %vm1332_vm0, %v1331_v3 }
 0x40b   : > { %v1497_v62 = vpop.f32.mrf.mxu1 }
 0x40d   : > { %v1241_v63 = vpop.f32.mrf.mxu1 }
 0x40f   : > { %v570_v0 = vpop.f32.mrf.mxu1  ;;  %v707_v1 = vpop.f32.mrf.mxu0 }
 0x411   : > { %v1242_v2 = vpop.f32.mrf.mxu1  ;;  %v1252_v4 = vpop.f32.mrf.mxu0 }
 0x413   : > { %v710_v5 = vpop.f32.mrf.mxu0  ;;  %v787_v6 = vpop.f32.mrf.mxu1 }
 0x414   : > { %v791_v7 = vmul.f32 0.35355338, %v787_v6 }
 0x415   : > { %v1253_v8 = vpop.f32.mrf.mxu0  ;;  %v1258_v9 = vpop.f32.mrf.mxu1 }
 0x416   : > { %v792_v10 = vsel %vm437_vm2, %v791_v7, -inf }
 0x417   : > { %793 = vmax.xlane.f32.xlu1 %v792_v10  ;;  %v926_v11 = vpop.f32.mrf.mxu0 }
 0x418   : > { %v930_v12 = vmul.f32 0.35355338, %v926_v11 }
 0x419   : > { %v1269_v13 = vpop.f32.mrf.mxu0 }
 0x41a   : > { %v931_v14 = vsel %vm437_vm2, %v930_v12, -inf  ;;  %v1188_v13 = vld [vmem:[%s1557_s7] ss:$0 sm:$0xff] }
 0x41b   : > { %932 = vmax.xlane.f32.xlu0 %v931_v14 }
 0x4a0   : > { %v794_v15 = vpop.xlane.xlu1 %793 }
 0x4a1   : > { %v795_v16 = vsub.f32 %v791_v7, %v794_v15 }
 0x4a3   : > { %v796_v17 = vmul.f32 1.442695, %v795_v16 }
 0x4a4   : > { %v933_v18 = vpop.xlane.xlu0 %932 }
 0x4a5   : > { %1313 = vpow2.f32 %v796_v17  ;;  %v934_v20 = vsub.f32 %v930_v12, %v933_v18 }
 0x4a7   : > { %v935_v21 = vmul.f32 1.442695, %v934_v20 }
 0x4a9   : > { %1315 = vpow2.f32 %v935_v21 }
 0x4b2   : > { %v1314_v22 = vpop.eup %1313 }
 0x4b3   : > { %v798_v23 = vsel %vm437_vm2, %v1314_v22, 0.0 }
 0x4b4   : > { %799 = vadd.xlane.f32.xlu0 %v798_v23 }
 0x4b6   : > { %v1316_v24 = vpop.eup %1315 }
 0x4b7   : > { %v937_v25 = vsel %vm437_vm2, %v1316_v24, 0.0 }
 0x4b8   : > { %938 = vadd.xlane.f32.xlu1 %v937_v25 }
 0x4c9   : > { %943 = vrot.lane.b32.xlu1 %v1468_v42, %s1339_s9 }
 0x4ca   : > { %804 = vrot.lane.b32.xlu0 %v1468_v42, %s1340_s10  ;;  %v1010_v42 = vld [vmem:[%s1554_s4 + $0x8] sm:$0xff]  ;;  %s317_s10 = scalar_lea.vmem %s1558_s8, %s1416_s15 }
 0x4cb   : > { %v1013_v43 = vpack.c.bf16 %v1010_v42, %v1009_v41 }
 0x4cd   : > { %992 = vrot.lane.b32.xlu1 %v707_v1, %s1341_s11 }
 0x53d   : > { %v800_v26 = vpop.xlane.xlu0 %799 }
 0x53e   : > { %1317 = vrcp.f32 %v800_v26 }
 0x541   : > { %v939_v27 = vpop.xlane.xlu1 %938  ;;  %v805_v28 = vpop.permute.xlu0 %804 }
 0x542   : > { %1319 = vrcp.f32 %v939_v27  ;;  %v810_v29 = vsel %vm529_vm3, %v805_v28, 0 }
 0x543   : > { %1260 = vmatpush3.bf16.msra.mxu1 %v810_v29 }
 0x544   : > { %1276 = vmatprep.subr.bf16.mxu1 %v1331_v3 }
 0x545   : > { %v944_v30 = vpop.permute.xlu1 %943 }
 0x546   : > { %v949_v31 = vsel %vm529_vm3, %v944_v30, 0 }
 0x547   : > { %1271 = vmatpush3.bf16.msra.mxu0 %v949_v31 }
 0x549   : > { %v993_v51 = vpop.permute.xlu1 %992 }
 0x54a   : > { %v1003_v53 = vsel %vm437_vm2, %v1497_v62, %v993_v51 }
 0x54b   : > { %v1318_v32 = vpop.eup %1317 }
 0x54c   : > { %v802_v33 = vmul.f32 %v1318_v32, %v1314_v22 }
 0x54e   : > { %v803_v34 = vpack.c.bf16 %v802_v33, %v802_v33 }
 0x54f   : > { %v1320_v35 = vpop.eup %1319 }
 0x550   : > { %1262 = vmatmul.mubr.msk.bf16.vlgmr.msra.gmra.mxu1 %vm437_vm2, %v803_v34  ;;  %v941_v36 = vmul.f32 %v1320_v35, %v1316_v24 }
 0x551   : > { %1280 = vmatprep.mubr.msk.bf16.mxu1 %vm1332_vm0, %v1331_v3  ;;  %1277 = vmatpush3.bf16.msra.mxu1 %v1014_v40 }
 0x552   : > { %v942_v37 = vpack.c.bf16 %v941_v36, %v941_v36  ;;  %1278 = vmatprep.subr.bf16.mxu1 %v1331_v3 }
 0x554   : > { %1273 = vmatmul.mubr.msk.bf16.vlgmr.msra.gmra.mxu0 %vm437_vm2, %v942_v37 }
 0x555   : > { %1279 = vmatpush3.bf16.msra.mxu1 %v1013_v43 }
 0x610   : > { %v846_v44 = vpop.f32.mrf.mxu1 }
 0x611   : > { %996 = vrot.lane.b32.xlu0 %v846_v44, %s1342_s21 }
 0x612   : > { %v1263_v45 = vpop.f32.mrf.mxu1 }
 0x614   : > { %v849_v46 = vpop.f32.mrf.mxu1  ;;  %v985_v47 = vpop.f32.mrf.mxu0 }
 0x615   : > { %1000 = vrot.lane.b32.xlu1 %v985_v47, %s1343_s22 }
 0x616   : > { %v1264_v48 = vpop.f32.mrf.mxu1  ;;  %v1274_v3 = vpop.f32.mrf.mxu0 }
 0x618   : > { %v988_v49 = vpop.f32.mrf.mxu0 }
 0x61a   : > { %v1275_v50 = vpop.f32.mrf.mxu0 }
 0x683   : > { %v997_v52 = vpop.permute.xlu0 %996 }
 0x684   : > { %v1005_v54 = vsel %vm1004_vm4, %v1003_v53, %v997_v52 }
 0x687   : > { %v1001_v55 = vpop.permute.xlu1 %1000 }
 0x688   : > { %v1007_v56 = vsel %vm1006_vm5, %v1005_v54, %v1001_v55 }
 0x689   : > { %v1008_v57 = vpack.c.bf16 %v1007_v56, %v1007_v56 }
 0x68b   : > { %1281 = vmatmul.mubr.msk.bf16.vlgmr.msra.gmra.mxu1 %vm336_vm1, %v1008_v57 }
 0x74b   : > { %v1059_v59 = vpop.f32.mrf.mxu1 }
 0x74c   : > { %v1060_v60 = vadd.f32 %v1185_v58, %v1059_v59 }
 0x74d   : > { %v1282_v61 = vpop.f32.mrf.mxu1 }
 0x74e   : > { %v1065_v63 = vadd.f32 %v1060_v60, %v1448_v19  ;;  %v1187_v19 = vld [vmem:[%s1556_s6] ss:$0 sm:$0xff] }
 0x74f   : > { %v1062_v0 = vpop.f32.mrf.mxu1 }
 0x750   : > { %v1066_v1 = vsel %vm336_vm1, %v1065_v63, 0.0 }
 0x751   : > { %1067 = vadd.xlane.f32.xlu0 %v1066_v1  ;;  %v1283_v62 = vpop.f32.mrf.mxu1 }
 0x7da   : > { %v1068_v2 = vpop.xlane.xlu0 %1067 }
 0x7db   : > { %v1070_v4 = vmul.f32 0.03125, %v1068_v2 }
 0x7dd   : > { %v1071_v5 = vsub.f32 %v1065_v63, %v1070_v4 }
 0x7df   : > { %v1072_v6 = vmul.f32 %v1071_v5, %v1071_v5 }
 0x7e1   : > { %v1073_v7 = vsel %vm336_vm1, %v1072_v6, 0.0 }
 0x7e2   : > { %1074 = vadd.xlane.f32.xlu1 %v1073_v7 }
 0x86b   : > { %v1075_v8 = vpop.xlane.xlu1 %1074 }
 0x86c   : > { %v1076_v9 = vmul.f32 0.03125, %v1075_v8 }
 0x86e   : > { %v1077_v10 = vadd.f32 1e-05, %v1076_v9 }
 0x870   : > { %1321 = vrsqrt.f32 %v1077_v10 }
 0x87d   : > { %v1322_v11 = vpop.eup %1321 }
 0x87e   : > { %v1079_v12 = vmul.f32 %v1322_v11, %v1071_v5 }
 0x880   : > { %v1087_v14 = vmul.f32 %v1187_v19, %v1079_v12 }
 0x882   : > { %v1095_v15 = vadd.f32 %v1188_v13, %v1087_v14 }
 0x884   : > { %1096 = vst.msk [vmem:[%s317_s10] sm:$0xff] %vm336_vm1, %v1095_v15 }
 0x885 PF: > { %s18_s27 = sadd.s32 1, %s1329_s27  }
 0x886   : > { %p15_p4 = scmp.ge.s32.totalorder %s18_s27, 4  }
 0x888   :  { %17 = sbr.rel (!%p15_p4) target bundleno = 1 (0x1), region = 85 }

</bundles_post_ra>
